<compile_context>
chip_gen: v7x
topology: tpu7x:2x2x1
jax: 0.10.0
libtpu: 0.0.40
codegen_flags: <defaults>
</compile_context>

<pallas_src>
import math
import jax
import jax.numpy as jnp
from jax.experimental import pallas as pl
from jax.experimental.pallas import tpu as pltpu

# ---------------------------------------------------------------- configuration
B = 256                      # demo batch (any B works; wrapper pads to TILE_B multiple)
C_IN, H_IMG, W_IMG = 4, 16, 16
D_IN = C_IN * H_IMG * W_IMG  # 1024
HIDDEN = 64                  # model hidden width (tunable)
HIDDEN_PAD = 128             # zero-padded to fill the 128-lane vreg / MXU columns
LATENT = 16                  # latent_dim
NUM_CLASSES = 8
NUM_FLOW_LAYERS = 4

TILE_B = 128                 # batch tile (multiple of 128 -> lane-dense outputs).
                             # 256-512 is fine on all gens (VMEM footprint < 2 MiB here);
                             # cap ~512 on v7x (64 MiB VMEM) or raise vmem_limit_bytes.

LOG_BUDGET = 0.5 * math.log(4.0 * math.pi) * LATENT   # certainty_budget == "normal"
PRIOR_EVIDENCE = float(NUM_CLASSES)                    # DirichletPrior(evidence=num_classes)
PRIOR_STATS = 1.0 / NUM_CLASSES                        # uniform sufficient statistics


def _softplus(x):
    return jnp.logaddexp(x, 0.0)


# ---------------------------------------------------------------- Pallas kernel
# All activations are feature-major: [feature, TILE_B] (batch on the lane axis).
def natpn_kernel(xT_ref, w1T_ref, b1c_ref, w2T_ref, b2c_ref, woT_ref, boc_ref,
                 z0T_ref, ap_ref, bp_ref,
                 alphaT_ref, logprobT_ref):
    # ---- encoder: flatten -> Linear -> ReLU -> Linear --------------------------------
    # bf16 operands on the MXU, f32 accumulation.
    hT = jnp.dot(w1T_ref[...], xT_ref[...],
                 preferred_element_type=jnp.float32) + b1c_ref[...]      # [HP, TB] f32
    hT = jnp.maximum(hT, 0.0)
    zT = jnp.dot(w2T_ref[...], hT,
                 preferred_element_type=jnp.float32) + b2c_ref[...]      # [LATENT, TB]
    # z is 2-D -> the `if z.dim() > 2: permute(0,2,3,1)` branch does not apply.

    # ---- output head: linear -> Categorical; expected sufficient statistics = softmax -
    logits = jnp.dot(woT_ref[...], zT,
                     preferred_element_type=jnp.float32) + boc_ref[...]  # [C, TB]
    logits = logits - jnp.max(logits, axis=0, keepdims=True)
    e = jnp.exp(logits)
    probs = e * pl.reciprocal(jnp.sum(e, axis=0, keepdims=True), approx=True)

    # ---- normalizing flow: radial transforms over z, standard-normal base -------------
    z0T = z0T_ref[...]                                                   # [LATENT, K]
    alpha_all = _softplus(ap_ref[...])                                   # [K, 1], > 0
    beta_all = -alpha_all + _softplus(bp_ref[...])                       # [K, 1], >= -alpha

    zk = zT                                                              # [LATENT, TB]
    log_det = jnp.zeros((1, TILE_B), jnp.float32)
    for k in range(NUM_FLOW_LAYERS):                                     # K is small & static
        z0 = z0T[:, k:k + 1]                                             # [LATENT, 1]
        a_k = alpha_all[k:k + 1, :]                                      # [1, 1]
        b_k = beta_all[k:k + 1, :]                                       # [1, 1]
        diff = zk - z0                                                   # [LATENT, TB]
        r = jnp.sqrt(jnp.sum(diff * diff, axis=0, keepdims=True))        # [1, TB]
        hh = pl.reciprocal(a_k + r, approx=True)                         # [1, TB]
        bh = b_k * hh
        zk = zk + bh * diff
        log_det = log_det + (LATENT - 1) * jnp.log1p(bh) \
                          + jnp.log1p(bh - b_k * hh * hh * r)
    log_base = -0.5 * jnp.sum(zk * zk, axis=0, keepdims=True) \
               - 0.5 * LATENT * math.log(2.0 * math.pi)
    log_prob = log_base + log_det                                        # [1, TB]

    # ---- evidence scaler (clamped) + Dirichlet-prior Bayesian update -------------------
    log_evidence = jnp.clip(log_prob + LOG_BUDGET, -30.0, 30.0)
    evidence = jnp.exp(log_evidence)                                     # [1, TB]
    alphaT_ref[...] = PRIOR_STATS * PRIOR_EVIDENCE + probs * evidence    # [C, TB]
    logprobT_ref[...] = log_prob                                         # [1, TB]


# ---------------------------------------------------------------- wrapper (glue)
def natpn_forward(x_nchw, params):
    bn = x_nchw.shape[0]
    x2d = x_nchw.reshape(bn, -1)                                         # == x.view(B, -1)
    bp = ((bn + TILE_B - 1) // TILE_B) * TILE_B
    if bp != bn:
        x2d = jnp.pad(x2d, ((0, bp - bn), (0, 0)))

    # Layout plumbing (free at trace time): feature-major + bf16 MXU feed + HIDDEN pad.
    xT = x2d.T.astype(jnp.bfloat16)                                      # [D_IN, Bp]
    w1T = jnp.pad(params["w1"], ((0, 0), (0, HIDDEN_PAD - HIDDEN))).T \
             .astype(jnp.bfloat16)                                       # [HP, D_IN]
    b1c = jnp.pad(params["b1"], ((0, 0), (0, HIDDEN_PAD - HIDDEN))).T    # [HP, 1]
    w2T = jnp.pad(params["w2"], ((0, HIDDEN_PAD - HIDDEN), (0, 0))).T    # [LATENT, HP]
    b2c = params["b2"].T                                                 # [LATENT, 1]
    woT = params["wo"].T                                                 # [C, LATENT]
    boc = params["bo"].T                                                 # [C, 1]
    z0T = params["flow_z0"].T                                            # [LATENT, K]

    grid = (bp // TILE_B,)
    resident = lambda i: (0, 0)                                          # stays in VMEM
    alpha_t, logprob_t = pl.pallas_call(
        natpn_kernel,
        out_shape=(jax.ShapeDtypeStruct((NUM_CLASSES, bp), jnp.float32),
                   jax.ShapeDtypeStruct((1, bp), jnp.float32)),
        grid=grid,
        in_specs=[
            pl.BlockSpec((D_IN, TILE_B), lambda i: (0, i)),              # xT (tiled on batch)
            pl.BlockSpec((HIDDEN_PAD, D_IN), resident),                  # w1T
            pl.BlockSpec((HIDDEN_PAD, 1), resident),                     # b1
            pl.BlockSpec((LATENT, HIDDEN_PAD), resident),                # w2T
            pl.BlockSpec((LATENT, 1), resident),                         # b2
            pl.BlockSpec((NUM_CLASSES, LATENT), resident),               # woT
            pl.BlockSpec((NUM_CLASSES, 1), resident),                    # bo
            pl.BlockSpec((LATENT, NUM_FLOW_LAYERS), resident),           # flow z0 (transposed)
            pl.BlockSpec((NUM_FLOW_LAYERS, 1), resident),                # flow alpha'
            pl.BlockSpec((NUM_FLOW_LAYERS, 1), resident),                # flow beta'
        ],
        out_specs=(pl.BlockSpec((NUM_CLASSES, TILE_B), lambda i: (0, i)),
                   pl.BlockSpec((1, TILE_B), lambda i: (0, i))),
        compiler_params=pltpu.CompilerParams(
            dimension_semantics=("parallel",)),                          # v7x megacore
    )(xT, w1T, b1c, w2T, b2c, woT, boc, z0T,
      params["flow_alpha_prime"], params["flow_beta_prime"])

    # forward() returns (posterior, log_prob); the Dirichlet posterior is fully described
    # by its concentration parameters `alpha`.
    alpha = alpha_t[:, :bn].T                                            # [B, C]
    log_prob = logprob_t[0, :bn]                                         # [B]
    return alpha, log_prob


# ---------------------------------------------------------------- reference (plain JAX)
def natpn_forward_ref(x_nchw, p):
    x = x_nchw.reshape(x_nchw.shape[0], -1)
    h = jnp.dot(x.astype(jnp.bfloat16), p["w1"].astype(jnp.bfloat16),
                preferred_element_type=jnp.float32) + p["b1"]
    h = jnp.maximum(h, 0.0)
    z = jnp.dot(h, p["w2"], preferred_element_type=jnp.float32) + p["b2"]
    logits = jnp.dot(z, p["wo"], preferred_element_type=jnp.float32) + p["bo"]
    probs = jax.nn.softmax(logits, axis=-1)
    zk, log_det = z, jnp.zeros((z.shape[0], 1), jnp.float32)
    for k in range(NUM_FLOW_LAYERS):
        z0 = p["flow_z0"][k:k + 1, :]
        alpha = jax.nn.softplus(p["flow_alpha_prime"][k:k + 1, 0:1])
        beta = -alpha + jax.nn.softplus(p["flow_beta_prime"][k:k + 1, 0:1])
        diff = zk - z0
        r = jnp.sqrt(jnp.sum(diff * diff, axis=-1, keepdims=True))
        hh = 1.0 / (alpha + r)
        bh = beta * hh
        zk = zk + bh * diff
        log_det = log_det + (LATENT - 1) * jnp.log1p(bh) + jnp.log1p(bh - beta * hh * hh * r)
    log_prob = (-0.5 * jnp.sum(zk * zk, axis=-1, keepdims=True)
                - 0.5 * LATENT * math.log(2.0 * math.pi) + log_det)
    ev = jnp.exp(jnp.clip(log_prob + LOG_BUDGET, -30.0, 30.0))
    return PRIOR_STATS * PRIOR_EVIDENCE + probs * ev, log_prob[:, 0]


# ---------------------------------------------------------------- params / main
def init_params(key):
    ks = jax.random.split(key, 8)
    def lin(k, fan_in, fan_out):
        return jax.random.normal(k, (fan_in, fan_out), jnp.float32) / math.sqrt(fan_in)
    return {
        "w1": lin(ks[0], D_IN, HIDDEN),
        "b1": jnp.zeros((1, HIDDEN), jnp.float32),
        "w2": lin(ks[1], HIDDEN, LATENT),
        "b2": jnp.zeros((1, LATENT), jnp.float32),
        "wo": lin(ks[2], LATENT, NUM_CLASSES),
        "bo": jnp.zeros((1, NUM_CLASSES), jnp.float32),
        "flow_z0": 0.1 * jax.random.normal(ks[3], (NUM_FLOW_LAYERS, LATENT), jnp.float32),
        "flow_alpha_prime": jax.random.normal(ks[4], (NUM_FLOW_LAYERS, 1), jnp.float32),
        "flow_beta_prime": jax.random.normal(ks[5], (NUM_FLOW_LAYERS, 1), jnp.float32),
    }


if __name__ == "__main__":
    key = jax.random.PRNGKey(0)
    kx, kp = jax.random.split(key)
    x = jax.random.normal(kx, (B, C_IN, H_IMG, W_IMG), jnp.float32)
    params = init_params(kp)

    alpha, log_prob = jax.jit(natpn_forward)(x, params)
    jax.block_until_ready((alpha, log_prob))

    alpha_ref, log_prob_ref = natpn_forward_ref(x, params)
    assert alpha.shape == (B, NUM_CLASSES) and log_prob.shape == (B,)
    assert bool(jnp.all(jnp.isfinite(alpha))) and bool(jnp.all(jnp.isfinite(log_prob)))
    # bf16 MXU feed + EUP approx reciprocals -> compare with a modest tolerance.
    assert bool(jnp.allclose(log_prob, log_prob_ref, rtol=5e-2, atol=5e-2))
    assert bool(jnp.allclose(alpha, alpha_ref, rtol=5e-2, atol=5e-2))

    print("KERNEL_OK")
</pallas_src>

<mosaic_0001>
module attributes {stable_mosaic.version = 11 : i64} {
  func.func @natpn_kernel(%arg0: i32, %arg1: memref<1024x128xbf16, #tpu.memory_space<vmem>>, %arg2: memref<128x1024xbf16, #tpu.memory_space<vmem>>, %arg3: memref<128x1xf32, #tpu.memory_space<vmem>>, %arg4: memref<16x128xf32, #tpu.memory_space<vmem>>, %arg5: memref<16x1xf32, #tpu.memory_space<vmem>>, %arg6: memref<8x16xf32, #tpu.memory_space<vmem>>, %arg7: memref<8x1xf32, #tpu.memory_space<vmem>>, %arg8: memref<16x4xf32, #tpu.memory_space<vmem>>, %arg9: memref<4x1xf32, #tpu.memory_space<vmem>>, %arg10: memref<4x1xf32, #tpu.memory_space<vmem>>, %arg11: memref<8x128xf32, #tpu.memory_space<vmem>>, %arg12: memref<1x128xf32, #tpu.memory_space<vmem>>) attributes {dimension_semantics = [#tpu.dimension_semantics<parallel>], iteration_bounds = array<i64: 2>, scalar_prefetch = 0 : i64, scratch_operands = 0 : i64, tpu.core_type = #tpu.core_type<tc>, window_params = [{transform_indices = @transform_0, window_bounds = array<i64: 1024, 128>}, {pipeline_mode = #tpu.pipeline_mode<synchronous>, transform_indices = @transform_1, window_bounds = array<i64: 128, 1024>}, {pipeline_mode = #tpu.pipeline_mode<synchronous>, transform_indices = @transform_2, window_bounds = array<i64: 128, 1>}, {pipeline_mode = #tpu.pipeline_mode<synchronous>, transform_indices = @transform_3, window_bounds = array<i64: 16, 128>}, {pipeline_mode = #tpu.pipeline_mode<synchronous>, transform_indices = @transform_4, window_bounds = array<i64: 16, 1>}, {pipeline_mode = #tpu.pipeline_mode<synchronous>, transform_indices = @transform_5, window_bounds = array<i64: 8, 16>}, {pipeline_mode = #tpu.pipeline_mode<synchronous>, transform_indices = @transform_6, window_bounds = array<i64: 8, 1>}, {pipeline_mode = #tpu.pipeline_mode<synchronous>, transform_indices = @transform_7, window_bounds = array<i64: 16, 4>}, {pipeline_mode = #tpu.pipeline_mode<synchronous>, transform_indices = @transform_8, window_bounds = array<i64: 4, 1>}, {pipeline_mode = #tpu.pipeline_mode<synchronous>, transform_indices = @transform_9, window_bounds = array<i64: 4, 1>}, {transform_indices = @transform_10, window_bounds = array<i64: 8, 128>}, {transform_indices = @transform_11, window_bounds = array<i64: 1, 128>}]} {
    %c0 = arith.constant 0 : index
    %c0_0 = arith.constant 0 : index
    %0 = vector.load %arg2[%c0, %c0_0] : memref<128x1024xbf16, #tpu.memory_space<vmem>>, vector<128x1024xbf16>
    %c0_1 = arith.constant 0 : index
    %c0_2 = arith.constant 0 : index
    %1 = vector.load %arg1[%c0_1, %c0_2] : memref<1024x128xbf16, #tpu.memory_space<vmem>>, vector<1024x128xbf16>
    %cst = arith.constant dense<0.000000e+00> : vector<128x128xf32>
    %2 = tpu.matmul %0, %1, %cst {dimension_numbers = #tpu.dot_dimension_numbers<[1], [0], [0], [1], [0, 0, 1, 1], [], []>} : vector<128x1024xbf16>, vector<1024x128xbf16>, vector<128x128xf32> -> vector<128x128xf32>
    %c0_3 = arith.constant 0 : index
    %c0_4 = arith.constant 0 : index
    %3 = vector.load %arg3[%c0_3, %c0_4] : memref<128x1xf32, #tpu.memory_space<vmem>>, vector<128x1xf32>
    %4 = vector.broadcast %3 : vector<128x1xf32> to vector<128x128xf32>
    %5 = arith.addf %2, %4 : vector<128x128xf32>
    %cst_5 = arith.constant 0.000000e+00 : f32
    %6 = vector.broadcast %cst_5 : f32 to vector<128x128xf32>
    %7 = arith.maximumf %5, %6 : vector<128x128xf32>
    %c0_6 = arith.constant 0 : index
    %c0_7 = arith.constant 0 : index
    %8 = vector.load %arg4[%c0_6, %c0_7] : memref<16x128xf32, #tpu.memory_space<vmem>>, vector<16x128xf32>
    %cst_8 = arith.constant dense<0.000000e+00> : vector<16x128xf32>
    %9 = tpu.matmul %8, %7, %cst_8 {dimension_numbers = #tpu.dot_dimension_numbers<[1], [0], [0], [1], [0, 0, 1, 1], [], []>} : vector<16x128xf32>, vector<128x128xf32>, vector<16x128xf32> -> vector<16x128xf32>
    %c0_9 = arith.constant 0 : index
    %c0_10 = arith.constant 0 : index
    %10 = vector.load %arg5[%c0_9, %c0_10] : memref<16x1xf32, #tpu.memory_space<vmem>>, vector<16x1xf32>
    %11 = vector.broadcast %10 : vector<16x1xf32> to vector<16x128xf32>
    %12 = arith.addf %9, %11 : vector<16x128xf32>
    %c0_11 = arith.constant 0 : index
    %c0_12 = arith.constant 0 : index
    %13 = vector.load %arg6[%c0_11, %c0_12] : memref<8x16xf32, #tpu.memory_space<vmem>>, vector<8x16xf32>
    %cst_13 = arith.constant dense<0.000000e+00> : vector<8x128xf32>
    %14 = tpu.matmul %13, %12, %cst_13 {dimension_numbers = #tpu.dot_dimension_numbers<[1], [0], [0], [1], [0, 0, 1, 1], [], []>} : vector<8x16xf32>, vector<16x128xf32>, vector<8x128xf32> -> vector<8x128xf32>
    %c0_14 = arith.constant 0 : index
    %c0_15 = arith.constant 0 : index
    %15 = vector.load %arg7[%c0_14, %c0_15] : memref<8x1xf32, #tpu.memory_space<vmem>>, vector<8x1xf32>
    %16 = vector.broadcast %15 : vector<8x1xf32> to vector<8x128xf32>
    %17 = arith.addf %14, %16 : vector<8x128xf32>
    %cst_16 = arith.constant dense<0xFF800000> : vector<128xf32>
    %18 = vector.multi_reduction <maximumf>, %17, %cst_16 [0] : vector<8x128xf32> to vector<128xf32>
    %19 = vector.shape_cast %18 : vector<128xf32> to vector<1x128xf32>
    %20 = vector.broadcast %19 : vector<1x128xf32> to vector<8x128xf32>
    %21 = arith.subf %17, %20 : vector<8x128xf32>
    %22 = math.exp %21 : vector<8x128xf32>
    %cst_17 = arith.constant dense<0.000000e+00> : vector<128xf32>
    %23 = vector.multi_reduction <add>, %22, %cst_17 [0] : vector<8x128xf32> to vector<128xf32>
    %24 = vector.shape_cast %23 : vector<128xf32> to vector<1x128xf32>
    %25 = tpu.reciprocal %24 {approx = true} : vector<1x128xf32> -> vector<1x128xf32>
    %26 = vector.broadcast %25 : vector<1x128xf32> to vector<8x128xf32>
    %27 = arith.mulf %22, %26 : vector<8x128xf32>
    %c0_18 = arith.constant 0 : index
    %c0_19 = arith.constant 0 : index
    %28 = vector.load %arg8[%c0_18, %c0_19] : memref<16x4xf32, #tpu.memory_space<vmem>>, vector<16x4xf32>
    %c0_20 = arith.constant 0 : index
    %c0_21 = arith.constant 0 : index
    %29 = vector.load %arg9[%c0_20, %c0_21] : memref<4x1xf32, #tpu.memory_space<vmem>>, vector<4x1xf32>
    %cst_22 = arith.constant 0.000000e+00 : f32
    %30 = vector.broadcast %cst_22 : f32 to vector<4x1xf32>
    %31 = arith.maximumf %29, %30 : vector<4x1xf32>
    %32 = vector.broadcast %cst_22 : f32 to vector<4x1xf32>
    %33 = arith.subf %29, %32 : vector<4x1xf32>
    %34 = arith.cmpf one, %33, %33 : vector<4x1xf32>
    %35 = vector.broadcast %cst_22 : f32 to vector<4x1xf32>
    %36 = arith.addf %29, %35 : vector<4x1xf32>
    %37 = math.absf %33 : vector<4x1xf32>
    %cst_23 = arith.constant 0.000000e+00 : f32
    %38 = vector.broadcast %cst_23 : f32 to vector<4x1xf32>
    %39 = arith.subf %38, %37 : vector<4x1xf32>
    %40 = math.exp %39 : vector<4x1xf32>
    %41 = math.log1p %40 : vector<4x1xf32>
    %42 = arith.addf %31, %41 : vector<4x1xf32>
    %43 = arith.select %34, %36, %42 : vector<4x1xi1>, vector<4x1xf32>
    %cst_24 = arith.constant 0.000000e+00 : f32
    %44 = vector.broadcast %cst_24 : f32 to vector<4x1xf32>
    %45 = arith.subf %44, %43 : vector<4x1xf32>
    %c0_25 = arith.constant 0 : index
    %c0_26 = arith.constant 0 : index
    %46 = vector.load %arg10[%c0_25, %c0_26] : memref<4x1xf32, #tpu.memory_space<vmem>>, vector<4x1xf32>
    %cst_27 = arith.constant 0.000000e+00 : f32
    %47 = vector.broadcast %cst_27 : f32 to vector<4x1xf32>
    %48 = arith.maximumf %46, %47 : vector<4x1xf32>
    %49 = vector.broadcast %cst_27 : f32 to vector<4x1xf32>
    %50 = arith.subf %46, %49 : vector<4x1xf32>
    %51 = arith.cmpf one, %50, %50 : vector<4x1xf32>
    %52 = vector.broadcast %cst_27 : f32 to vector<4x1xf32>
    %53 = arith.addf %46, %52 : vector<4x1xf32>
    %54 = math.absf %50 : vector<4x1xf32>
    %cst_28 = arith.constant 0.000000e+00 : f32
    %55 = vector.broadcast %cst_28 : f32 to vector<4x1xf32>
    %56 = arith.subf %55, %54 : vector<4x1xf32>
    %57 = math.exp %56 : vector<4x1xf32>
    %58 = math.log1p %57 : vector<4x1xf32>
    %59 = arith.addf %48, %58 : vector<4x1xf32>
    %60 = arith.select %51, %53, %59 : vector<4x1xi1>, vector<4x1xf32>
    %61 = arith.addf %45, %60 : vector<4x1xf32>
    %cst_29 = arith.constant 0.000000e+00 : f32
    %62 = vector.broadcast %cst_29 : f32 to vector<1x128xf32>
    %63 = vector.extract_strided_slice %28 {offsets = [0, 0], sizes = [16, 1], strides = [1, 1]} : vector<16x4xf32> to vector<16x1xf32>
    %64 = vector.extract_strided_slice %43 {offsets = [0, 0], sizes = [1, 1], strides = [1, 1]} : vector<4x1xf32> to vector<1x1xf32>
    %65 = vector.extract_strided_slice %61 {offsets = [0, 0], sizes = [1, 1], strides = [1, 1]} : vector<4x1xf32> to vector<1x1xf32>
    %66 = vector.broadcast %63 : vector<16x1xf32> to vector<16x128xf32>
    %67 = arith.subf %12, %66 : vector<16x128xf32>
    %68 = arith.mulf %67, %67 : vector<16x128xf32>
    %cst_30 = arith.constant dense<0.000000e+00> : vector<128xf32>
    %69 = vector.multi_reduction <add>, %68, %cst_30 [0] : vector<16x128xf32> to vector<128xf32>
    %70 = vector.shape_cast %69 : vector<128xf32> to vector<1x128xf32>
    %71 = math.sqrt %70 : vector<1x128xf32>
    %72 = vector.broadcast %64 : vector<1x1xf32> to vector<1x128xf32>
    %73 = arith.addf %72, %71 : vector<1x128xf32>
    %74 = tpu.reciprocal %73 {approx = true} : vector<1x128xf32> -> vector<1x128xf32>
    %75 = vector.broadcast %65 : vector<1x1xf32> to vector<1x128xf32>
    %76 = arith.mulf %75, %74 : vector<1x128xf32>
    %77 = vector.broadcast %76 : vector<1x128xf32> to vector<16x128xf32>
    %78 = arith.mulf %77, %67 : vector<16x128xf32>
    %79 = arith.addf %12, %78 : vector<16x128xf32>
    %80 = math.log1p %76 : vector<1x128xf32>
    %cst_31 = arith.constant 1.500000e+01 : f32
    %81 = vector.broadcast %cst_31 : f32 to vector<1x128xf32>
    %82 = arith.mulf %81, %80 : vector<1x128xf32>
    %83 = arith.addf %62, %82 : vector<1x128xf32>
    %84 = vector.broadcast %65 : vector<1x1xf32> to vector<1x128xf32>
    %85 = arith.mulf %84, %74 : vector<1x128xf32>
    %86 = arith.mulf %85, %74 : vector<1x128xf32>
    %87 = arith.mulf %86, %71 : vector<1x128xf32>
    %88 = arith.subf %76, %87 : vector<1x128xf32>
    %89 = math.log1p %88 : vector<1x128xf32>
    %90 = arith.addf %83, %89 : vector<1x128xf32>
    %91 = vector.extract_strided_slice %28 {offsets = [0, 1], sizes = [16, 1], strides = [1, 1]} : vector<16x4xf32> to vector<16x1xf32>
    %92 = vector.extract_strided_slice %43 {offsets = [1, 0], sizes = [1, 1], strides = [1, 1]} : vector<4x1xf32> to vector<1x1xf32>
    %93 = vector.extract_strided_slice %61 {offsets = [1, 0], sizes = [1, 1], strides = [1, 1]} : vector<4x1xf32> to vector<1x1xf32>
    %94 = vector.broadcast %91 : vector<16x1xf32> to vector<16x128xf32>
    %95 = arith.subf %79, %94 : vector<16x128xf32>
    %96 = arith.mulf %95, %95 : vector<16x128xf32>
    %cst_32 = arith.constant dense<0.000000e+00> : vector<128xf32>
    %97 = vector.multi_reduction <add>, %96, %cst_32 [0] : vector<16x128xf32> to vector<128xf32>
    %98 = vector.shape_cast %97 : vector<128xf32> to vector<1x128xf32>
    %99 = math.sqrt %98 : vector<1x128xf32>
    %100 = vector.broadcast %92 : vector<1x1xf32> to vector<1x128xf32>
    %101 = arith.addf %100, %99 : vector<1x128xf32>
    %102 = tpu.reciprocal %101 {approx = true} : vector<1x128xf32> -> vector<1x128xf32>
    %103 = vector.broadcast %93 : vector<1x1xf32> to vector<1x128xf32>
    %104 = arith.mulf %103, %102 : vector<1x128xf32>
    %105 = vector.broadcast %104 : vector<1x128xf32> to vector<16x128xf32>
    %106 = arith.mulf %105, %95 : vector<16x128xf32>
    %107 = arith.addf %79, %106 : vector<16x128xf32>
    %108 = math.log1p %104 : vector<1x128xf32>
    %cst_33 = arith.constant 1.500000e+01 : f32
    %109 = vector.broadcast %cst_33 : f32 to vector<1x128xf32>
    %110 = arith.mulf %109, %108 : vector<1x128xf32>
    %111 = arith.addf %90, %110 : vector<1x128xf32>
    %112 = vector.broadcast %93 : vector<1x1xf32> to vector<1x128xf32>
    %113 = arith.mulf %112, %102 : vector<1x128xf32>
    %114 = arith.mulf %113, %102 : vector<1x128xf32>
    %115 = arith.mulf %114, %99 : vector<1x128xf32>
    %116 = arith.subf %104, %115 : vector<1x128xf32>
    %117 = math.log1p %116 : vector<1x128xf32>
    %118 = arith.addf %111, %117 : vector<1x128xf32>
    %119 = vector.extract_strided_slice %28 {offsets = [0, 2], sizes = [16, 1], strides = [1, 1]} : vector<16x4xf32> to vector<16x1xf32>
    %120 = vector.extract_strided_slice %43 {offsets = [2, 0], sizes = [1, 1], strides = [1, 1]} : vector<4x1xf32> to vector<1x1xf32>
    %121 = vector.extract_strided_slice %61 {offsets = [2, 0], sizes = [1, 1], strides = [1, 1]} : vector<4x1xf32> to vector<1x1xf32>
    %122 = vector.broadcast %119 : vector<16x1xf32> to vector<16x128xf32>
    %123 = arith.subf %107, %122 : vector<16x128xf32>
    %124 = arith.mulf %123, %123 : vector<16x128xf32>
    %cst_34 = arith.constant dense<0.000000e+00> : vector<128xf32>
    %125 = vector.multi_reduction <add>, %124, %cst_34 [0] : vector<16x128xf32> to vector<128xf32>
    %126 = vector.shape_cast %125 : vector<128xf32> to vector<1x128xf32>
    %127 = math.sqrt %126 : vector<1x128xf32>
    %128 = vector.broadcast %120 : vector<1x1xf32> to vector<1x128xf32>
    %129 = arith.addf %128, %127 : vector<1x128xf32>
    %130 = tpu.reciprocal %129 {approx = true} : vector<1x128xf32> -> vector<1x128xf32>
    %131 = vector.broadcast %121 : vector<1x1xf32> to vector<1x128xf32>
    %132 = arith.mulf %131, %130 : vector<1x128xf32>
    %133 = vector.broadcast %132 : vector<1x128xf32> to vector<16x128xf32>
    %134 = arith.mulf %133, %123 : vector<16x128xf32>
    %135 = arith.addf %107, %134 : vector<16x128xf32>
    %136 = math.log1p %132 : vector<1x128xf32>
    %cst_35 = arith.constant 1.500000e+01 : f32
    %137 = vector.broadcast %cst_35 : f32 to vector<1x128xf32>
    %138 = arith.mulf %137, %136 : vector<1x128xf32>
    %139 = arith.addf %118, %138 : vector<1x128xf32>
    %140 = vector.broadcast %121 : vector<1x1xf32> to vector<1x128xf32>
    %141 = arith.mulf %140, %130 : vector<1x128xf32>
    %142 = arith.mulf %141, %130 : vector<1x128xf32>
    %143 = arith.mulf %142, %127 : vector<1x128xf32>
    %144 = arith.subf %132, %143 : vector<1x128xf32>
    %145 = math.log1p %144 : vector<1x128xf32>
    %146 = arith.addf %139, %145 : vector<1x128xf32>
    %147 = vector.extract_strided_slice %28 {offsets = [0, 3], sizes = [16, 1], strides = [1, 1]} : vector<16x4xf32> to vector<16x1xf32>
    %148 = vector.extract_strided_slice %43 {offsets = [3, 0], sizes = [1, 1], strides = [1, 1]} : vector<4x1xf32> to vector<1x1xf32>
    %149 = vector.extract_strided_slice %61 {offsets = [3, 0], sizes = [1, 1], strides = [1, 1]} : vector<4x1xf32> to vector<1x1xf32>
    %150 = vector.broadcast %147 : vector<16x1xf32> to vector<16x128xf32>
    %151 = arith.subf %135, %150 : vector<16x128xf32>
    %152 = arith.mulf %151, %151 : vector<16x128xf32>
    %cst_36 = arith.constant dense<0.000000e+00> : vector<128xf32>
    %153 = vector.multi_reduction <add>, %152, %cst_36 [0] : vector<16x128xf32> to vector<128xf32>
    %154 = vector.shape_cast %153 : vector<128xf32> to vector<1x128xf32>
    %155 = math.sqrt %154 : vector<1x128xf32>
    %156 = vector.broadcast %148 : vector<1x1xf32> to vector<1x128xf32>
    %157 = arith.addf %156, %155 : vector<1x128xf32>
    %158 = tpu.reciprocal %157 {approx = true} : vector<1x128xf32> -> vector<1x128xf32>
    %159 = vector.broadcast %149 : vector<1x1xf32> to vector<1x128xf32>
    %160 = arith.mulf %159, %158 : vector<1x128xf32>
    %161 = vector.broadcast %160 : vector<1x128xf32> to vector<16x128xf32>
    %162 = arith.mulf %161, %151 : vector<16x128xf32>
    %163 = arith.addf %135, %162 : vector<16x128xf32>
    %164 = math.log1p %160 : vector<1x128xf32>
    %cst_37 = arith.constant 1.500000e+01 : f32
    %165 = vector.broadcast %cst_37 : f32 to vector<1x128xf32>
    %166 = arith.mulf %165, %164 : vector<1x128xf32>
    %167 = arith.addf %146, %166 : vector<1x128xf32>
    %168 = vector.broadcast %149 : vector<1x1xf32> to vector<1x128xf32>
    %169 = arith.mulf %168, %158 : vector<1x128xf32>
    %170 = arith.mulf %169, %158 : vector<1x128xf32>
    %171 = arith.mulf %170, %155 : vector<1x128xf32>
    %172 = arith.subf %160, %171 : vector<1x128xf32>
    %173 = math.log1p %172 : vector<1x128xf32>
    %174 = arith.addf %167, %173 : vector<1x128xf32>
    %175 = arith.mulf %163, %163 : vector<16x128xf32>
    %cst_38 = arith.constant dense<0.000000e+00> : vector<128xf32>
    %176 = vector.multi_reduction <add>, %175, %cst_38 [0] : vector<16x128xf32> to vector<128xf32>
    %177 = vector.shape_cast %176 : vector<128xf32> to vector<1x128xf32>
    %cst_39 = arith.constant -5.000000e-01 : f32
    %178 = vector.broadcast %cst_39 : f32 to vector<1x128xf32>
    %179 = arith.mulf %178, %177 : vector<1x128xf32>
    %cst_40 = arith.constant 14.7030163 : f32
    %180 = vector.broadcast %cst_40 : f32 to vector<1x128xf32>
    %181 = arith.subf %179, %180 : vector<1x128xf32>
    %182 = arith.addf %181, %174 : vector<1x128xf32>
    %cst_41 = arith.constant 20.2481937 : f32
    %183 = vector.broadcast %cst_41 : f32 to vector<1x128xf32>
    %184 = arith.addf %182, %183 : vector<1x128xf32>
    %cst_42 = arith.constant -3.000000e+01 : f32
    %cst_43 = arith.constant 3.000000e+01 : f32
    %185 = vector.broadcast %cst_42 : f32 to vector<1x128xf32>
    %186 = arith.maximumf %185, %184 : vector<1x128xf32>
    %187 = vector.broadcast %cst_43 : f32 to vector<1x128xf32>
    %188 = arith.minimumf %187, %186 : vector<1x128xf32>
    %189 = math.exp %188 : vector<1x128xf32>
    %190 = vector.broadcast %189 : vector<1x128xf32> to vector<8x128xf32>
    %191 = arith.mulf %27, %190 : vector<8x128xf32>
    %cst_44 = arith.constant 1.000000e+00 : f32
    %192 = vector.broadcast %cst_44 : f32 to vector<8x128xf32>
    %193 = arith.addf %192, %191 : vector<8x128xf32>
    %c0_45 = arith.constant 0 : index
    %c0_46 = arith.constant 0 : index
    %194 = vector.load %arg11[%c0_45, %c0_46] : memref<8x128xf32, #tpu.memory_space<vmem>>, vector<8x128xf32>
    tpu.vector_store %arg11[%c0_45, %c0_46], %193 {strides = array<i32>} : memref<8x128xf32, #tpu.memory_space<vmem>>, vector<8x128xf32>,
    %c0_47 = arith.constant 0 : index
    %c0_48 = arith.constant 0 : index
    %195 = vector.load %arg12[%c0_47, %c0_48] : memref<1x128xf32, #tpu.memory_space<vmem>>, vector<1x128xf32>
    tpu.vector_store %arg12[%c0_47, %c0_48], %182 {strides = array<i32>} : memref<1x128xf32, #tpu.memory_space<vmem>>, vector<1x128xf32>,
    return
  }
  func.func @transform_0(%arg0: i32) -> (i32, i32) {
    %c0_i32 = arith.constant 0 : i32
    %c0_i32_0 = arith.constant 0 : i32
    return %c0_i32, %arg0 : i32, i32
  }
  func.func @transform_1(%arg0: i32) -> (i32, i32) {
    %c0_i32 = arith.constant 0 : i32
    %c0_i32_0 = arith.constant 0 : i32
    %c0_i32_1 = arith.constant 0 : i32
    return %c0_i32, %c0_i32_0 : i32, i32
  }
  func.func @transform_2(%arg0: i32) -> (i32, i32) {
    %c0_i32 = arith.constant 0 : i32
    %c0_i32_0 = arith.constant 0 : i32
    %c0_i32_1 = arith.constant 0 : i32
    return %c0_i32, %c0_i32_0 : i32, i32
  }
  func.func @transform_3(%arg0: i32) -> (i32, i32) {
    %c0_i32 = arith.constant 0 : i32
    %c0_i32_0 = arith.constant 0 : i32
    %c0_i32_1 = arith.constant 0 : i32
    return %c0_i32, %c0_i32_0 : i32, i32
  }
  func.func @transform_4(%arg0: i32) -> (i32, i32) {
    %c0_i32 = arith.constant 0 : i32
    %c0_i32_0 = arith.constant 0 : i32
    %c0_i32_1 = arith.constant 0 : i32
    return %c0_i32, %c0_i32_0 : i32, i32
  }
  func.func @transform_5(%arg0: i32) -> (i32, i32) {
    %c0_i32 = arith.constant 0 : i32
    %c0_i32_0 = arith.constant 0 : i32
    %c0_i32_1 = arith.constant 0 : i32
    return %c0_i32, %c0_i32_0 : i32, i32
  }
  func.func @transform_6(%arg0: i32) -> (i32, i32) {
    %c0_i32 = arith.constant 0 : i32
    %c0_i32_0 = arith.constant 0 : i32
    %c0_i32_1 = arith.constant 0 : i32
    return %c0_i32, %c0_i32_0 : i32, i32
  }
  func.func @transform_7(%arg0: i32) -> (i32, i32) {
    %c0_i32 = arith.constant 0 : i32
    %c0_i32_0 = arith.constant 0 : i32
    %c0_i32_1 = arith.constant 0 : i32
    return %c0_i32, %c0_i32_0 : i32, i32
  }
  func.func @transform_8(%arg0: i32) -> (i32, i32) {
    %c0_i32 = arith.constant 0 : i32
    %c0_i32_0 = arith.constant 0 : i32
    %c0_i32_1 = arith.constant 0 : i32
    return %c0_i32, %c0_i32_0 : i32, i32
  }
  func.func @transform_9(%arg0: i32) -> (i32, i32) {
    %c0_i32 = arith.constant 0 : i32
    %c0_i32_0 = arith.constant 0 : i32
    %c0_i32_1 = arith.constant 0 : i32
    return %c0_i32, %c0_i32_0 : i32, i32
  }
  func.func @transform_10(%arg0: i32) -> (i32, i32) {
    %c0_i32 = arith.constant 0 : i32
    %c0_i32_0 = arith.constant 0 : i32
    return %c0_i32, %arg0 : i32, i32
  }
  func.func @transform_11(%arg0: i32) -> (i32, i32) {
    %c0_i32 = arith.constant 0 : i32
    %c0_i32_0 = arith.constant 0 : i32
    return %c0_i32, %arg0 : i32, i32
  }
}

</mosaic_0001>

<bundles_post_ra>
// kernel: natpn_forward.1
= control target key start
LH: loop header
LB: loop body
LE: loop exit
PB: predicated region body
PF: predicated region fallthrough
CT: control target
= control target key end

     0   :  { %s4678_s0 = inlined_call_operand.vmem [shape: bf16[1024,256], index: 0, kind: input, shape index: {}]   ;;  %s4679_s1 = inlined_call_operand.vmem [shape: bf16[128,1024], index: 1, kind: input, shape index: {}]   ;;  %s4680_s2 = inlined_call_operand.vmem [shape: f32[128,1], index: 2, kind: input, shape index: {}]   ;;  %s4681_s3 = inlined_call_operand.vmem [shape: f32[16,128], index: 3, kind: input, shape index: {}]   ;;  %s4682_s4 = inlined_call_operand.vmem [shape: f32[16,1], index: 4, kind: input, shape index: {}]   ;;  %s4683_s5 = inlined_call_operand.vmem [shape: f32[8,16], index: 5, kind: input, shape index: {}]   ;;  %s4684_s6 = inlined_call_operand.vmem [shape: f32[8,1], index: 6, kind: input, shape index: {}]   ;;  %s4685_s7 = inlined_call_operand.vmem [shape: f32[16,4], index: 7, kind: input, shape index: {}]   ;;  %s4686_s8 = inlined_call_operand.vmem [shape: f32[4,1], index: 8, kind: input, shape index: {}]   ;;  %s4687_s9 = inlined_call_operand.vmem [shape: f32[4,1], index: 9, kind: input, shape index: {}]   ;;  %s4688_s10 = inlined_call_operand.hbm [shape: f32[8,256], index: 10, kind: output, shape index: {0}]   ;;  %s4689_s11 = inlined_call_operand.hbm [shape: f32[1,256], index: 11, kind: output, shape index: {1}]  }
   0x1   :  { %4690 = sst [smem:[#allocation10_spill]] %s4678_s0 }
   0x2   :  { %17 = vsyncpa [#allocation4], 0 }
   0x3   :  { %19 = vsyncpa [#allocation4 + $0x1], 0 }
   0x4   :  { %20 = vsyncpa [#allocation6], 0 }
   0x5   :  { %22 = vsyncpa [#allocation6 + $0x1], 0  ;;  %s3826_s17 = smov 0   ;;  %s3828_s18 = smov 0  }
   0x6   :  { %s3830_s19 = smov 0   ;;  %s3832_s20 = smov 0  }
   0x7 LB: > { %s3847_s21 = sadd.s32 4294967295, %s3755_s20   ;;  %s2993_s22 = sadd.s32 4294967294, %s3755_s20   ;;  %s3755_s20 = sphi %s3832_s20, %s4699_s20   ;;  %s3751_s19 = sphi %s3830_s19, %s4698_s19   ;;  %s3747_s18 = sphi %s3828_s18, %s4697_s18   ;;  %s3743_s17 = sphi %s3826_s17, %s4696_s17  }
   0x8   : > { %s3851_s23 = sadd.s32 1, %s3755_s20   ;;  %s35_s24 = sadd.s32 1, %s3751_s19 }
   0x9   : > { %s32_s25 = ssub.s32 %s3755_s20, %s3851_s23  ;;  %p42_p0 = scmp.ne.s32.totalorder %s3751_s19, %s3747_s18 }
   0xa   : > { %p33_p1 = scmp.eq.s32.totalorder %s32_s25, 0  ;;  %p43_p2 = scmp.eq.s32.totalorder %s3755_s20, 0 }
   0xb   : > { %p261_p3 = scmp.eq.s32.totalorder %s3847_s21, 1  ;;  %p266_p4 = scmp.ne.s32.totalorder %s3747_s18, %s3743_s17 }
   0xc   : > { %s3863_s26 = scalar_select %p33_p1, %s3751_s19, %s35_s24  }
   0xd   : > { %p44_p5 = por %p43_p2, %p42_p0  ;;  %p3865_p6 = por %p261_p3, %p42_p0 }
   0xe   : > { %4691 = sst [smem:[#allocation9_spill]] %s3863_s26  ;;  %p267_p7 = scmp.eq.s32.totalorder %s2993_s22, 1 }
   0xf   : > { %p2995_p9 = scmp.ge.s32.totalorder %s3755_s20, 2 }
  0x10   : > { %p3869_p8 = por %p267_p7, %p266_p4 }
  0x11   : > { %336 = sbr.rel (%p2995_p9) target bundleno = 119 (0x77), region = 52 }
  0x18   : > { %339 = sbr.rel (!%p44_p5) target bundleno = 119 (0x77), region = 56  ;;  %s341_s29 = sand.u32 (%p44_p5), 1, %s3751_s19  }
  0x19   : > { %s2997_s30 = sshll.u32 (%p44_p5), %s3755_s20, 2  ;;  %s2996_s12 = sshll.u32 (%p44_p5), %s341_s29, 9 }
  0x1a   : > { %s4694_s0 = sld [smem:[#allocation10_spill]] (%p44_p5)  ;;  %s3885_s16 = scalar_lea.vmem (%p44_p5), [#allocation2], %s2996_s12 }
  0x20   : > { %s3881_s15 = scalar_lea.vmem %s4694_s0, %s2997_s30 }
  0x21   : > { %v361_v0 = vld [vmem:[%s3881_s15] sm:$0xf]  ;;  %v363_v1 = vld [vmem:[%s3881_s15 + $0x8] sm:$0xf]  ;;  %v365_v2 = vld [vmem:[%s3881_s15 + $0x10] sm:$0xf] }
  0x22   : > { %362 = vst [vmem:[%s3885_s16] sm:$0xf] %v361_v0  ;;  %364 = vst [vmem:[%s3885_s16 + $0x4] sm:$0xf] %v363_v1  ;;  %v367_v3 = vld [vmem:[%s3881_s15 + $0x18] sm:$0xf] }
  0x23   : > { %v369_v4 = vld [vmem:[%s3881_s15 + $0x20] sm:$0xf]  ;;  %366 = vst [vmem:[%s3885_s16 + $0x8] sm:$0xf] %v365_v2  ;;  %368 = vst [vmem:[%s3885_s16 + $0xc] sm:$0xf] %v367_v3 }
  0x24   : > { %370 = vst [vmem:[%s3885_s16 + $0x10] sm:$0xf] %v369_v4  ;;  %v371_v5 = vld [vmem:[%s3881_s15 + $0x28] sm:$0xf]  ;;  %v373_v6 = vld [vmem:[%s3881_s15 + $0x30] sm:$0xf] }
  0x25   : > { %v375_v7 = vld [vmem:[%s3881_s15 + $0x38] sm:$0xf]  ;;  %372 = vst [vmem:[%s3885_s16 + $0x14] sm:$0xf] %v371_v5  ;;  %374 = vst [vmem:[%s3885_s16 + $0x18] sm:$0xf] %v373_v6 }
  0x26   : > { %376 = vst [vmem:[%s3885_s16 + $0x1c] sm:$0xf] %v375_v7  ;;  %v377_v8 = vld [vmem:[%s3881_s15 + $0x40] sm:$0xf]  ;;  %v379_v9 = vld [vmem:[%s3881_s15 + $0x48] sm:$0xf] }
  0x27   : > { %v381_v10 = vld [vmem:[%s3881_s15 + $0x50] sm:$0xf]  ;;  %378 = vst [vmem:[%s3885_s16 + $0x20] sm:$0xf] %v377_v8  ;;  %380 = vst [vmem:[%s3885_s16 + $0x24] sm:$0xf] %v379_v9 }
  0x28   : > { %382 = vst [vmem:[%s3885_s16 + $0x28] sm:$0xf] %v381_v10  ;;  %v383_v11 = vld [vmem:[%s3881_s15 + $0x58] sm:$0xf]  ;;  %v385_v12 = vld [vmem:[%s3881_s15 + $0x60] sm:$0xf] }
  0x29   : > { %v387_v13 = vld [vmem:[%s3881_s15 + $0x68] sm:$0xf]  ;;  %384 = vst [vmem:[%s3885_s16 + $0x2c] sm:$0xf] %v383_v11  ;;  %386 = vst [vmem:[%s3885_s16 + $0x30] sm:$0xf] %v385_v12 }
  0x2a   : > { %388 = vst [vmem:[%s3885_s16 + $0x34] sm:$0xf] %v387_v13  ;;  %v389_v14 = vld [vmem:[%s3881_s15 + $0x70] sm:$0xf]  ;;  %v391_v15 = vld [vmem:[%s3881_s15 + $0x78] sm:$0xf] }
  0x2b   : > { %v393_v16 = vld [vmem:[%s3881_s15 + $0x80] sm:$0xf]  ;;  %390 = vst [vmem:[%s3885_s16 + $0x38] sm:$0xf] %v389_v14  ;;  %392 = vst [vmem:[%s3885_s16 + $0x3c] sm:$0xf] %v391_v15 }
  0x2c   : > { %394 = vst [vmem:[%s3885_s16 + $0x40] sm:$0xf] %v393_v16  ;;  %v395_v17 = vld [vmem:[%s3881_s15 + $0x88] sm:$0xf]  ;;  %v397_v18 = vld [vmem:[%s3881_s15 + $0x90] sm:$0xf] }
  0x2d   : > { %v399_v19 = vld [vmem:[%s3881_s15 + $0x98] sm:$0xf]  ;;  %396 = vst [vmem:[%s3885_s16 + $0x44] sm:$0xf] %v395_v17  ;;  %398 = vst [vmem:[%s3885_s16 + $0x48] sm:$0xf] %v397_v18 }
  0x2e   : > { %400 = vst [vmem:[%s3885_s16 + $0x4c] sm:$0xf] %v399_v19  ;;  %v401_v20 = vld [vmem:[%s3881_s15 + $0xa0] sm:$0xf]  ;;  %v403_v21 = vld [vmem:[%s3881_s15 + $0xa8] sm:$0xf] }
  0x2f   : > { %v405_v22 = vld [vmem:[%s3881_s15 + $0xb0] sm:$0xf]  ;;  %402 = vst [vmem:[%s3885_s16 + $0x50] sm:$0xf] %v401_v20  ;;  %404 = vst [vmem:[%s3885_s16 + $0x54] sm:$0xf] %v403_v21 }
  0x30   : > { %406 = vst [vmem:[%s3885_s16 + $0x58] sm:$0xf] %v405_v22  ;;  %v407_v23 = vld [vmem:[%s3881_s15 + $0xb8] sm:$0xf]  ;;  %v409_v24 = vld [vmem:[%s3881_s15 + $0xc0] sm:$0xf] }
  0x31   : > { %v411_v25 = vld [vmem:[%s3881_s15 + $0xc8] sm:$0xf]  ;;  %408 = vst [vmem:[%s3885_s16 + $0x5c] sm:$0xf] %v407_v23  ;;  %410 = vst [vmem:[%s3885_s16 + $0x60] sm:$0xf] %v409_v24 }
  0x32   : > { %412 = vst [vmem:[%s3885_s16 + $0x64] sm:$0xf] %v411_v25  ;;  %v413_v26 = vld [vmem:[%s3881_s15 + $0xd0] sm:$0xf]  ;;  %v415_v27 = vld [vmem:[%s3881_s15 + $0xd8] sm:$0xf] }
  0x33   : > { %v417_v28 = vld [vmem:[%s3881_s15 + $0xe0] sm:$0xf]  ;;  %414 = vst [vmem:[%s3885_s16 + $0x68] sm:$0xf] %v413_v26  ;;  %416 = vst [vmem:[%s3885_s16 + $0x6c] sm:$0xf] %v415_v27 }
  0x34   : > { %418 = vst [vmem:[%s3885_s16 + $0x70] sm:$0xf] %v417_v28  ;;  %v419_v29 = vld [vmem:[%s3881_s15 + $0xe8] sm:$0xf]  ;;  %v421_v30 = vld [vmem:[%s3881_s15 + $0xf0] sm:$0xf] }
  0x35   : > { %v423_v31 = vld [vmem:[%s3881_s15 + $0xf8] sm:$0xf]  ;;  %420 = vst [vmem:[%s3885_s16 + $0x74] sm:$0xf] %v419_v29  ;;  %422 = vst [vmem:[%s3885_s16 + $0x78] sm:$0xf] %v421_v30 }
  0x36   : > { %424 = vst [vmem:[%s3885_s16 + $0x7c] sm:$0xf] %v423_v31  ;;  %v425_v32 = vld [vmem:[%s3881_s15 + $0x100] sm:$0xf]  ;;  %v427_v33 = vld [vmem:[%s3881_s15 + $0x108] sm:$0xf] }
  0x37   : > { %v429_v34 = vld [vmem:[%s3881_s15 + $0x110] sm:$0xf]  ;;  %426 = vst [vmem:[%s3885_s16 + $0x80] sm:$0xf] %v425_v32  ;;  %428 = vst [vmem:[%s3885_s16 + $0x84] sm:$0xf] %v427_v33 }
  0x38   : > { %430 = vst [vmem:[%s3885_s16 + $0x88] sm:$0xf] %v429_v34  ;;  %v431_v35 = vld [vmem:[%s3881_s15 + $0x118] sm:$0xf]  ;;  %v433_v36 = vld [vmem:[%s3881_s15 + $0x120] sm:$0xf] }
  0x39   : > { %v435_v37 = vld [vmem:[%s3881_s15 + $0x128] sm:$0xf]  ;;  %432 = vst [vmem:[%s3885_s16 + $0x8c] sm:$0xf] %v431_v35  ;;  %434 = vst [vmem:[%s3885_s16 + $0x90] sm:$0xf] %v433_v36 }
  0x3a   : > { %436 = vst [vmem:[%s3885_s16 + $0x94] sm:$0xf] %v435_v37  ;;  %v437_v38 = vld [vmem:[%s3881_s15 + $0x130] sm:$0xf]  ;;  %v439_v39 = vld [vmem:[%s3881_s15 + $0x138] sm:$0xf] }
  0x3b   : > { %v441_v40 = vld [vmem:[%s3881_s15 + $0x140] sm:$0xf]  ;;  %438 = vst [vmem:[%s3885_s16 + $0x98] sm:$0xf] %v437_v38  ;;  %440 = vst [vmem:[%s3885_s16 + $0x9c] sm:$0xf] %v439_v39 }
  0x3c   : > { %442 = vst [vmem:[%s3885_s16 + $0xa0] sm:$0xf] %v441_v40  ;;  %v443_v41 = vld [vmem:[%s3881_s15 + $0x148] sm:$0xf]  ;;  %v445_v42 = vld [vmem:[%s3881_s15 + $0x150] sm:$0xf] }
  0x3d   : > { %v447_v43 = vld [vmem:[%s3881_s15 + $0x158] sm:$0xf]  ;;  %444 = vst [vmem:[%s3885_s16 + $0xa4] sm:$0xf] %v443_v41  ;;  %446 = vst [vmem:[%s3885_s16 + $0xa8] sm:$0xf] %v445_v42 }
  0x3e   : > { %448 = vst [vmem:[%s3885_s16 + $0xac] sm:$0xf] %v447_v43  ;;  %v449_v44 = vld [vmem:[%s3881_s15 + $0x160] sm:$0xf]  ;;  %v451_v45 = vld [vmem:[%s3881_s15 + $0x168] sm:$0xf] }
  0x3f   : > { %v453_v46 = vld [vmem:[%s3881_s15 + $0x170] sm:$0xf]  ;;  %450 = vst [vmem:[%s3885_s16 + $0xb0] sm:$0xf] %v449_v44  ;;  %452 = vst [vmem:[%s3885_s16 + $0xb4] sm:$0xf] %v451_v45 }
  0x40   : > { %454 = vst [vmem:[%s3885_s16 + $0xb8] sm:$0xf] %v453_v46  ;;  %v455_v47 = vld [vmem:[%s3881_s15 + $0x178] sm:$0xf]  ;;  %v457_v48 = vld [vmem:[%s3881_s15 + $0x180] sm:$0xf] }
  0x41   : > { %v459_v49 = vld [vmem:[%s3881_s15 + $0x188] sm:$0xf]  ;;  %456 = vst [vmem:[%s3885_s16 + $0xbc] sm:$0xf] %v455_v47  ;;  %458 = vst [vmem:[%s3885_s16 + $0xc0] sm:$0xf] %v457_v48 }
  0x42   : > { %460 = vst [vmem:[%s3885_s16 + $0xc4] sm:$0xf] %v459_v49  ;;  %v461_v50 = vld [vmem:[%s3881_s15 + $0x190] sm:$0xf]  ;;  %v463_v51 = vld [vmem:[%s3881_s15 + $0x198] sm:$0xf] }
  0x43   : > { %v465_v52 = vld [vmem:[%s3881_s15 + $0x1a0] sm:$0xf]  ;;  %462 = vst [vmem:[%s3885_s16 + $0xc8] sm:$0xf] %v461_v50  ;;  %464 = vst [vmem:[%s3885_s16 + $0xcc] sm:$0xf] %v463_v51 }
  0x44   : > { %466 = vst [vmem:[%s3885_s16 + $0xd0] sm:$0xf] %v465_v52  ;;  %v467_v53 = vld [vmem:[%s3881_s15 + $0x1a8] sm:$0xf]  ;;  %v469_v54 = vld [vmem:[%s3881_s15 + $0x1b0] sm:$0xf] }
  0x45   : > { %v471_v55 = vld [vmem:[%s3881_s15 + $0x1b8] sm:$0xf]  ;;  %468 = vst [vmem:[%s3885_s16 + $0xd4] sm:$0xf] %v467_v53  ;;  %470 = vst [vmem:[%s3885_s16 + $0xd8] sm:$0xf] %v469_v54 }
  0x46   : > { %472 = vst [vmem:[%s3885_s16 + $0xdc] sm:$0xf] %v471_v55  ;;  %v473_v56 = vld [vmem:[%s3881_s15 + $0x1c0] sm:$0xf]  ;;  %v475_v57 = vld [vmem:[%s3881_s15 + $0x1c8] sm:$0xf] }
  0x47   : > { %v477_v58 = vld [vmem:[%s3881_s15 + $0x1d0] sm:$0xf]  ;;  %474 = vst [vmem:[%s3885_s16 + $0xe0] sm:$0xf] %v473_v56  ;;  %476 = vst [vmem:[%s3885_s16 + $0xe4] sm:$0xf] %v475_v57 }
  0x48   : > { %478 = vst [vmem:[%s3885_s16 + $0xe8] sm:$0xf] %v477_v58  ;;  %v479_v59 = vld [vmem:[%s3881_s15 + $0x1d8] sm:$0xf]  ;;  %v481_v60 = vld [vmem:[%s3881_s15 + $0x1e0] sm:$0xf] }
  0x49   : > { %v483_v61 = vld [vmem:[%s3881_s15 + $0x1e8] sm:$0xf]  ;;  %480 = vst [vmem:[%s3885_s16 + $0xec] sm:$0xf] %v479_v59  ;;  %482 = vst [vmem:[%s3885_s16 + $0xf0] sm:$0xf] %v481_v60 }
  0x4a   : > { %484 = vst [vmem:[%s3885_s16 + $0xf4] sm:$0xf] %v483_v61  ;;  %v485_v62 = vld [vmem:[%s3881_s15 + $0x1f0] sm:$0xf]  ;;  %v487_v63 = vld [vmem:[%s3881_s15 + $0x1f8] sm:$0xf] }
  0x4b   : > { %v489_v0 = vld [vmem:[%s3881_s15 + $0x200] sm:$0xf]  ;;  %486 = vst [vmem:[%s3885_s16 + $0xf8] sm:$0xf] %v485_v62  ;;  %488 = vst [vmem:[%s3885_s16 + $0xfc] sm:$0xf] %v487_v63 }
  0x4c   : > { %490 = vst [vmem:[%s3885_s16 + $0x100] sm:$0xf] %v489_v0  ;;  %v491_v1 = vld [vmem:[%s3881_s15 + $0x208] sm:$0xf]  ;;  %v493_v2 = vld [vmem:[%s3881_s15 + $0x210] sm:$0xf] }
  0x4d   : > { %v495_v3 = vld [vmem:[%s3881_s15 + $0x218] sm:$0xf]  ;;  %492 = vst [vmem:[%s3885_s16 + $0x104] sm:$0xf] %v491_v1  ;;  %494 = vst [vmem:[%s3885_s16 + $0x108] sm:$0xf] %v493_v2 }
  0x4e   : > { %496 = vst [vmem:[%s3885_s16 + $0x10c] sm:$0xf] %v495_v3  ;;  %v497_v4 = vld [vmem:[%s3881_s15 + $0x220] sm:$0xf]  ;;  %v499_v5 = vld [vmem:[%s3881_s15 + $0x228] sm:$0xf] }
  0x4f   : > { %v501_v6 = vld [vmem:[%s3881_s15 + $0x230] sm:$0xf]  ;;  %498 = vst [vmem:[%s3885_s16 + $0x110] sm:$0xf] %v497_v4  ;;  %500 = vst [vmem:[%s3885_s16 + $0x114] sm:$0xf] %v499_v5 }
  0x50   : > { %502 = vst [vmem:[%s3885_s16 + $0x118] sm:$0xf] %v501_v6  ;;  %v503_v7 = vld [vmem:[%s3881_s15 + $0x238] sm:$0xf]  ;;  %v505_v8 = vld [vmem:[%s3881_s15 + $0x240] sm:$0xf] }
  0x51   : > { %v507_v9 = vld [vmem:[%s3881_s15 + $0x248] sm:$0xf]  ;;  %504 = vst [vmem:[%s3885_s16 + $0x11c] sm:$0xf] %v503_v7  ;;  %506 = vst [vmem:[%s3885_s16 + $0x120] sm:$0xf] %v505_v8 }
  0x52   : > { %508 = vst [vmem:[%s3885_s16 + $0x124] sm:$0xf] %v507_v9  ;;  %v509_v10 = vld [vmem:[%s3881_s15 + $0x250] sm:$0xf]  ;;  %v511_v11 = vld [vmem:[%s3881_s15 + $0x258] sm:$0xf] }
  0x53   : > { %v513_v12 = vld [vmem:[%s3881_s15 + $0x260] sm:$0xf]  ;;  %510 = vst [vmem:[%s3885_s16 + $0x128] sm:$0xf] %v509_v10  ;;  %512 = vst [vmem:[%s3885_s16 + $0x12c] sm:$0xf] %v511_v11 }
  0x54   : > { %514 = vst [vmem:[%s3885_s16 + $0x130] sm:$0xf] %v513_v12  ;;  %v515_v13 = vld [vmem:[%s3881_s15 + $0x268] sm:$0xf]  ;;  %v517_v14 = vld [vmem:[%s3881_s15 + $0x270] sm:$0xf] }
  0x55   : > { %v519_v15 = vld [vmem:[%s3881_s15 + $0x278] sm:$0xf]  ;;  %516 = vst [vmem:[%s3885_s16 + $0x134] sm:$0xf] %v515_v13  ;;  %518 = vst [vmem:[%s3885_s16 + $0x138] sm:$0xf] %v517_v14 }
  0x56   : > { %520 = vst [vmem:[%s3885_s16 + $0x13c] sm:$0xf] %v519_v15  ;;  %v521_v16 = vld [vmem:[%s3881_s15 + $0x280] sm:$0xf]  ;;  %v523_v17 = vld [vmem:[%s3881_s15 + $0x288] sm:$0xf] }
  0x57   : > { %v525_v18 = vld [vmem:[%s3881_s15 + $0x290] sm:$0xf]  ;;  %522 = vst [vmem:[%s3885_s16 + $0x140] sm:$0xf] %v521_v16  ;;  %524 = vst [vmem:[%s3885_s16 + $0x144] sm:$0xf] %v523_v17 }
  0x58   : > { %526 = vst [vmem:[%s3885_s16 + $0x148] sm:$0xf] %v525_v18  ;;  %v527_v19 = vld [vmem:[%s3881_s15 + $0x298] sm:$0xf]  ;;  %v529_v20 = vld [vmem:[%s3881_s15 + $0x2a0] sm:$0xf] }
  0x59   : > { %v531_v21 = vld [vmem:[%s3881_s15 + $0x2a8] sm:$0xf]  ;;  %528 = vst [vmem:[%s3885_s16 + $0x14c] sm:$0xf] %v527_v19  ;;  %530 = vst [vmem:[%s3885_s16 + $0x150] sm:$0xf] %v529_v20 }
  0x5a   : > { %532 = vst [vmem:[%s3885_s16 + $0x154] sm:$0xf] %v531_v21  ;;  %v533_v22 = vld [vmem:[%s3881_s15 + $0x2b0] sm:$0xf]  ;;  %v535_v23 = vld [vmem:[%s3881_s15 + $0x2b8] sm:$0xf] }
  0x5b   : > { %v537_v24 = vld [vmem:[%s3881_s15 + $0x2c0] sm:$0xf]  ;;  %534 = vst [vmem:[%s3885_s16 + $0x158] sm:$0xf] %v533_v22  ;;  %536 = vst [vmem:[%s3885_s16 + $0x15c] sm:$0xf] %v535_v23 }
  0x5c   : > { %538 = vst [vmem:[%s3885_s16 + $0x160] sm:$0xf] %v537_v24  ;;  %v539_v25 = vld [vmem:[%s3881_s15 + $0x2c8] sm:$0xf]  ;;  %v541_v26 = vld [vmem:[%s3881_s15 + $0x2d0] sm:$0xf] }
  0x5d   : > { %v543_v27 = vld [vmem:[%s3881_s15 + $0x2d8] sm:$0xf]  ;;  %540 = vst [vmem:[%s3885_s16 + $0x164] sm:$0xf] %v539_v25  ;;  %542 = vst [vmem:[%s3885_s16 + $0x168] sm:$0xf] %v541_v26 }
  0x5e   : > { %544 = vst [vmem:[%s3885_s16 + $0x16c] sm:$0xf] %v543_v27  ;;  %v545_v28 = vld [vmem:[%s3881_s15 + $0x2e0] sm:$0xf]  ;;  %v547_v29 = vld [vmem:[%s3881_s15 + $0x2e8] sm:$0xf] }
  0x5f   : > { %v549_v30 = vld [vmem:[%s3881_s15 + $0x2f0] sm:$0xf]  ;;  %546 = vst [vmem:[%s3885_s16 + $0x170] sm:$0xf] %v545_v28  ;;  %548 = vst [vmem:[%s3885_s16 + $0x174] sm:$0xf] %v547_v29 }
  0x60   : > { %550 = vst [vmem:[%s3885_s16 + $0x178] sm:$0xf] %v549_v30  ;;  %v551_v31 = vld [vmem:[%s3881_s15 + $0x2f8] sm:$0xf]  ;;  %v553_v32 = vld [vmem:[%s3881_s15 + $0x300] sm:$0xf] }
  0x61   : > { %v555_v33 = vld [vmem:[%s3881_s15 + $0x308] sm:$0xf]  ;;  %552 = vst [vmem:[%s3885_s16 + $0x17c] sm:$0xf] %v551_v31  ;;  %554 = vst [vmem:[%s3885_s16 + $0x180] sm:$0xf] %v553_v32 }
  0x62   : > { %556 = vst [vmem:[%s3885_s16 + $0x184] sm:$0xf] %v555_v33  ;;  %v557_v34 = vld [vmem:[%s3881_s15 + $0x310] sm:$0xf]  ;;  %v559_v35 = vld [vmem:[%s3881_s15 + $0x318] sm:$0xf] }
  0x63   : > { %v561_v36 = vld [vmem:[%s3881_s15 + $0x320] sm:$0xf]  ;;  %558 = vst [vmem:[%s3885_s16 + $0x188] sm:$0xf] %v557_v34  ;;  %560 = vst [vmem:[%s3885_s16 + $0x18c] sm:$0xf] %v559_v35 }
  0x64   : > { %562 = vst [vmem:[%s3885_s16 + $0x190] sm:$0xf] %v561_v36  ;;  %v563_v37 = vld [vmem:[%s3881_s15 + $0x328] sm:$0xf]  ;;  %v565_v38 = vld [vmem:[%s3881_s15 + $0x330] sm:$0xf] }
  0x65   : > { %v567_v39 = vld [vmem:[%s3881_s15 + $0x338] sm:$0xf]  ;;  %564 = vst [vmem:[%s3885_s16 + $0x194] sm:$0xf] %v563_v37  ;;  %566 = vst [vmem:[%s3885_s16 + $0x198] sm:$0xf] %v565_v38 }
  0x66   : > { %568 = vst [vmem:[%s3885_s16 + $0x19c] sm:$0xf] %v567_v39  ;;  %v569_v40 = vld [vmem:[%s3881_s15 + $0x340] sm:$0xf]  ;;  %v571_v41 = vld [vmem:[%s3881_s15 + $0x348] sm:$0xf] }
  0x67   : > { %v573_v42 = vld [vmem:[%s3881_s15 + $0x350] sm:$0xf]  ;;  %570 = vst [vmem:[%s3885_s16 + $0x1a0] sm:$0xf] %v569_v40  ;;  %572 = vst [vmem:[%s3885_s16 + $0x1a4] sm:$0xf] %v571_v41 }
  0x68   : > { %574 = vst [vmem:[%s3885_s16 + $0x1a8] sm:$0xf] %v573_v42  ;;  %v575_v43 = vld [vmem:[%s3881_s15 + $0x358] sm:$0xf]  ;;  %v577_v44 = vld [vmem:[%s3881_s15 + $0x360] sm:$0xf] }
  0x69   : > { %v579_v45 = vld [vmem:[%s3881_s15 + $0x368] sm:$0xf]  ;;  %576 = vst [vmem:[%s3885_s16 + $0x1ac] sm:$0xf] %v575_v43  ;;  %578 = vst [vmem:[%s3885_s16 + $0x1b0] sm:$0xf] %v577_v44 }
  0x6a   : > { %580 = vst [vmem:[%s3885_s16 + $0x1b4] sm:$0xf] %v579_v45  ;;  %v581_v46 = vld [vmem:[%s3881_s15 + $0x370] sm:$0xf]  ;;  %v583_v47 = vld [vmem:[%s3881_s15 + $0x378] sm:$0xf] }
  0x6b   : > { %v585_v48 = vld [vmem:[%s3881_s15 + $0x380] sm:$0xf]  ;;  %582 = vst [vmem:[%s3885_s16 + $0x1b8] sm:$0xf] %v581_v46  ;;  %584 = vst [vmem:[%s3885_s16 + $0x1bc] sm:$0xf] %v583_v47 }
  0x6c   : > { %586 = vst [vmem:[%s3885_s16 + $0x1c0] sm:$0xf] %v585_v48  ;;  %v587_v49 = vld [vmem:[%s3881_s15 + $0x388] sm:$0xf]  ;;  %v589_v50 = vld [vmem:[%s3881_s15 + $0x390] sm:$0xf] }
  0x6d   : > { %v591_v51 = vld [vmem:[%s3881_s15 + $0x398] sm:$0xf]  ;;  %588 = vst [vmem:[%s3885_s16 + $0x1c4] sm:$0xf] %v587_v49  ;;  %590 = vst [vmem:[%s3885_s16 + $0x1c8] sm:$0xf] %v589_v50 }
  0x6e   : > { %592 = vst [vmem:[%s3885_s16 + $0x1cc] sm:$0xf] %v591_v51  ;;  %v593_v52 = vld [vmem:[%s3881_s15 + $0x3a0] sm:$0xf]  ;;  %v595_v53 = vld [vmem:[%s3881_s15 + $0x3a8] sm:$0xf] }
  0x6f   : > { %v597_v54 = vld [vmem:[%s3881_s15 + $0x3b0] sm:$0xf]  ;;  %594 = vst [vmem:[%s3885_s16 + $0x1d0] sm:$0xf] %v593_v52  ;;  %596 = vst [vmem:[%s3885_s16 + $0x1d4] sm:$0xf] %v595_v53 }
  0x70   : > { %598 = vst [vmem:[%s3885_s16 + $0x1d8] sm:$0xf] %v597_v54  ;;  %v599_v55 = vld [vmem:[%s3881_s15 + $0x3b8] sm:$0xf]  ;;  %v601_v56 = vld [vmem:[%s3881_s15 + $0x3c0] sm:$0xf] }
  0x71   : > { %v603_v57 = vld [vmem:[%s3881_s15 + $0x3c8] sm:$0xf]  ;;  %600 = vst [vmem:[%s3885_s16 + $0x1dc] sm:$0xf] %v599_v55  ;;  %602 = vst [vmem:[%s3885_s16 + $0x1e0] sm:$0xf] %v601_v56 }
  0x72   : > { %604 = vst [vmem:[%s3885_s16 + $0x1e4] sm:$0xf] %v603_v57  ;;  %v605_v58 = vld [vmem:[%s3881_s15 + $0x3d0] sm:$0xf]  ;;  %v607_v59 = vld [vmem:[%s3881_s15 + $0x3d8] sm:$0xf] }
  0x73   : > { %v609_v60 = vld [vmem:[%s3881_s15 + $0x3e0] sm:$0xf]  ;;  %606 = vst [vmem:[%s3885_s16 + $0x1e8] sm:$0xf] %v605_v58  ;;  %608 = vst [vmem:[%s3885_s16 + $0x1ec] sm:$0xf] %v607_v59 }
  0x74   : > { %610 = vst [vmem:[%s3885_s16 + $0x1f0] sm:$0xf] %v609_v60  ;;  %v611_v61 = vld [vmem:[%s3881_s15 + $0x3e8] sm:$0xf]  ;;  %v613_v62 = vld [vmem:[%s3881_s15 + $0x3f0] sm:$0xf] }
  0x75   : > { %v615_v63 = vld [vmem:[%s3881_s15 + $0x3f8] sm:$0xf]  ;;  %612 = vst [vmem:[%s3885_s16 + $0x1f4] sm:$0xf] %v611_v61  ;;  %614 = vst [vmem:[%s3885_s16 + $0x1f8] sm:$0xf] %v613_v62 }
  0x76   : > { %616 = vst [vmem:[%s3885_s16 + $0x1fc] sm:$0xf] %v615_v63 }
  0x77 PF: > { %p2998_p10 = scmp.ge.s32.totalorder %s3755_s20, 1  ;;  %p894_p11 = scmp.lt.s32.totalorder %s3755_s20, 3 }
  0x79   : > { %p895_p12 = pnand %p2998_p10, %p894_p11 }
  0x7a   : > { %s4144_s22 = sand.u32 (!%p895_p12), 1, %s3747_s18   ;;  %v4149_v0 = vld [vmem:[%s4679_s1] sm:$0xff] (!%p895_p12)  ;;  %v4159_v2 = vld [vmem:[%s4679_s1 + $0x8] sm:$0xff] (!%p895_p12)  ;;  %v3757_v5 = vmov (!%p895_p12), 0   ;;  %vm3761_vm4 = vmmov (!%p895_p12), 0   ;;  %vm2437_vm5 = vcmask (!%p895_p12), 130048  }
  0x7b   : > { %898 = sbr.rel (%p895_p12) target bundleno = 1018 (0x3fa), region = 97  ;;  %v4154_v1 = vld [vmem:[%s4679_s1 + $0x20] sm:$0xff] (!%p895_p12)  ;;  %s2999_s14 = sshll.u32 (!%p895_p12), %s4144_s22, 9  ;;  %v4167_v4 = vld [vmem:[%s4679_s1 + $0x28] sm:$0xff] (!%p895_p12)  ;;  %3542 = vset.pattern.permute.xlu0 (!%p895_p12), %v3757_v5  ;;  %3543 = vset.pattern.permute.xlu1 (!%p895_p12), %v3757_v5 }
  0x7c   : > { %v3002_v3 = vcombine.high (!%p895_p12), %v4149_v0, %v4154_v1  ;;  %v3004_v6 = vcombine.high (!%p895_p12), %v4159_v2, %v4167_v4  ;;  %s4173_s24 = scalar_lea.vmem (!%p895_p12), [#allocation2], %s2999_s14  ;;  %v953_v35 = vld [vmem:[%s4679_s1 + $0x40] sm:$0xff] (!%p895_p12)  ;;  %v954_v38 = vld [vmem:[%s4679_s1 + $0x48] sm:$0xff] (!%p895_p12)  ;;  %v3001_v43 = vcombine.low (!%p895_p12), %v4149_v0, %v4154_v1  ;;  %v3003_v44 = vcombine.low (!%p895_p12), %v4159_v2, %v4167_v4  ;;  %s3134_s12 = sshll.u32 (!%p895_p12), %s3847_s21, 4 }
  0x7d   : > { %v3551_v7 = vld [vmem:[%s4173_s24 + $0x40] sm:$0xff] (!%p895_p12)   ;;  %v3555_v11 = vld [vmem:[%s4173_s24 + $0x48] sm:$0xff] (!%p895_p12)   ;;  %v3559_v15 = vld [vmem:[%s4173_s24 + $0x50] sm:$0xff] (!%p895_p12)   ;;  %s943_s13 = scalar_lea.vmem (!%p895_p12), [#allocation5], %s4144_s22  ;;  %s4601_s15 = scalar_lea.hbm (!%p895_p12), %s4689_s11, %s3134_s12 }
  0x7e   : > { %1969 = vmatprep.mubr.bf16.mxu0 (!%p895_p12), %v3002_v3  ;;  %v3552_v8 = vld [vmem:[%s4173_s24 + $0xc0] sm:$0xff] (!%p895_p12)   ;;  %2066 = vmatprep.mubr.bf16.mxu1 (!%p895_p12), %v3004_v6  ;;  %v3556_v12 = vld [vmem:[%s4173_s24 + $0xc8] sm:$0xff] (!%p895_p12)   ;;  %v3560_v16 = vld [vmem:[%s4173_s24 + $0xd0] sm:$0xff] (!%p895_p12)   ;;  %s2900_s0 = sshll.u32 (!%p895_p12), %s943_s13, 4  ;;  %s2875_s26 = scalar_lea.sflag (!%p895_p12), [#allocation6], %s4144_s22  ;;  %s4603_s0 = int_to_ptr.vmem [resolvable:$true] %s2900_s0 }
  0x7f   : > { %3137 = vmatprep.subr.bf16.mxu0 (!%p895_p12), %v3551_v7  ;;  %v3553_v9 = vld [vmem:[%s4173_s24] sm:$0xff] (!%p895_p12)   ;;  %3201 = vmatprep.subr.bf16.mxu1 (!%p895_p12), %v3552_v8  ;;  %v3557_v13 = vld [vmem:[%s4173_s24 + $0x8] sm:$0xff] (!%p895_p12)   ;;  %v3561_v17 = vld [vmem:[%s4173_s24 + $0x10] sm:$0xff] (!%p895_p12)   ;;  %s3661_s16 = scalar_lea.vmem (!%p895_p12), %s4603_s0, 16  ;;  %s3764_s25 = smov (!%p895_p12), [#allocation5]  }
  0x80   : > { %v3554_v10 = vld [vmem:[%s4173_s24 + $0x80] sm:$0xff] (!%p895_p12)   ;;  %3138 = vmatpush3.bf16.msra.mxu0 (!%p895_p12), %v3553_v9  ;;  %v3558_v14 = vld [vmem:[%s4173_s24 + $0x88] sm:$0xff] (!%p895_p12)   ;;  %v3562_v18 = vld [vmem:[%s4173_s24 + $0x90] sm:$0xff] (!%p895_p12)   ;;  %p3662_p13 = scmp.ne.s32.totalorder (!%p895_p12), %s4603_s0, %s3661_s16  ;;  %s3665_s29 = sshll.u32 (!%p895_p12), %s3764_s25, 4  ;;  %s3666_s29 = int_to_ptr.vmem [resolvable:$false] %s3665_s29 }
  0x81   : > { %3202 = vmatpush3.bf16.msra.mxu1 (!%p895_p12), %v3554_v10  ;;  %3139 = vmatprep.subr.bf16.mxu0 (!%p895_p12), %v3555_v11  ;;  %v3563_v19 = vld [vmem:[%s4173_s24 + $0x58] sm:$0xff] (!%p895_p12)   ;;  %v3567_v23 = vld [vmem:[%s4173_s24 + $0x60] sm:$0xff] (!%p895_p12)   ;;  %v3571_v27 = vld [vmem:[%s4173_s24 + $0x68] sm:$0xff] (!%p895_p12)   ;;  %s3667_s30 = scalar_lea.vmem (!%p895_p12), %s3666_s29, 32  ;;  %p3668_p2 = scmp.lt.s32.totalorder (!%p895_p12), %s4603_s0, %s3666_s29 }
  0x82   : > { %3203 = vmatprep.subr.bf16.mxu1 %v3556_v12  ;;  %v3564_v20 = vld [vmem:[%s4173_s24 + $0xd8] sm:$0xff]   ;;  %v3568_v24 = vld [vmem:[%s4173_s24 + $0xe0] sm:$0xff]   ;;  %v3572_v28 = vld [vmem:[%s4173_s24 + $0xe8] sm:$0xff]   ;;  %p3663_p0 = pnand %p3662_p13, %p3865_p6  ;;  %p3669_p3 = scmp.lt.s32.totalorder %s3667_s30, %s3661_s16 }
  0x83   : > { %v3565_v21 = vld [vmem:[%s4173_s24 + $0x18] sm:$0xff]   ;;  %v3569_v25 = vld [vmem:[%s4173_s24 + $0x20] sm:$0xff]   ;;  %v3573_v29 = vld [vmem:[%s4173_s24 + $0x28] sm:$0xff]  }
  0x84   : > { %3140 = vmatpush3.bf16.msra.mxu0 %v3557_v13  ;;  %v3566_v22 = vld [vmem:[%s4173_s24 + $0x98] sm:$0xff]   ;;  %v3570_v26 = vld [vmem:[%s4173_s24 + $0xa0] sm:$0xff]   ;;  %v3574_v30 = vld [vmem:[%s4173_s24 + $0xa8] sm:$0xff]   ;;  %p3664_p1 = pneg %p3663_p0  ;;  %p3670_p4 = por %p3669_p3, %p3668_p2 }
  0x85   : > { %3204 = vmatpush3.bf16.msra.mxu1 %v3558_v14  ;;  %3141 = vmatprep.subr.bf16.mxu0 %v3559_v15  ;;  %v3575_v31 = vld [vmem:[%s4173_s24 + $0x70] sm:$0xff]   ;;  %v957_v36 = vld [vmem:[%s4679_s1 + $0x60] sm:$0xff]  ;;  %v3579_v37 = vld [vmem:[%s4173_s24 + $0x78] sm:$0xff]  }
  0x86   : > { %3205 = vmatprep.subr.bf16.mxu1 %v3560_v16  ;;  %v3576_v32 = vld [vmem:[%s4173_s24 + $0xf0] sm:$0xff]   ;;  %v958_v39 = vld [vmem:[%s4679_s1 + $0x68] sm:$0xff]  ;;  %v3580_v40 = vld [vmem:[%s4173_s24 + $0xf8] sm:$0xff]   ;;  %v3010_v45 = vcombine.high %v953_v35, %v957_v36  ;;  %v3009_v54 = vcombine.low %v953_v35, %v957_v36  ;;  %p3671_p5 = pnand %p3670_p4, %p3664_p1 }
  0x87   : > { %v3577_v33 = vld [vmem:[%s4173_s24 + $0x30] sm:$0xff]   ;;  %v3581_v41 = vld [vmem:[%s4173_s24 + $0x38] sm:$0xff]   ;;  %v3012_v46 = vcombine.high %v954_v38, %v958_v39  ;;  %v961_v47 = vld [vmem:[%s4679_s1 + $0x80] sm:$0xff]  ;;  %v3011_v56 = vcombine.low %v954_v38, %v958_v39 }
  0x88   : > { %3142 = vmatpush3.bf16.msra.mxu0 %v3561_v17  ;;  %v3578_v34 = vld [vmem:[%s4173_s24 + $0xb0] sm:$0xff]   ;;  %v3582_v42 = vld [vmem:[%s4173_s24 + $0xb8] sm:$0xff]   ;;  %v965_v48 = vld [vmem:[%s4679_s1 + $0xa0] sm:$0xff] }
  0x89   : > { %3206 = vmatpush3.bf16.msra.mxu1 %v3562_v18  ;;  %3143 = vmatprep.subr.bf16.mxu0 %v3563_v19  ;;  %v962_v49 = vld [vmem:[%s4679_s1 + $0x88] sm:$0xff]  ;;  %v3583_v51 = vld [vmem:[%s4173_s24 + $0x140] sm:$0xff]   ;;  %v3018_v57 = vcombine.high %v961_v47, %v965_v48  ;;  %v3591_v3 = vld [vmem:[%s4173_s24 + $0x150] sm:$0xff]   ;;  %v3017_v6 = vcombine.low %v961_v47, %v965_v48 }
  0x8a   : > { %3207 = vmatprep.subr.bf16.mxu1 %v3564_v20  ;;  %v966_v50 = vld [vmem:[%s4679_s1 + $0xa8] sm:$0xff]  ;;  %v3584_v52 = vld [vmem:[%s4173_s24 + $0x1c0] sm:$0xff]   ;;  %v3592_v4 = vld [vmem:[%s4173_s24 + $0x1d0] sm:$0xff]  }
  0x8b   : > { %v3585_v53 = vld [vmem:[%s4173_s24 + $0x100] sm:$0xff]   ;;  %v3587_v58 = vld [vmem:[%s4173_s24 + $0x148] sm:$0xff]   ;;  %v3020_v59 = vcombine.high %v962_v49, %v966_v50  ;;  %v3593_v7 = vld [vmem:[%s4173_s24 + $0x110] sm:$0xff]   ;;  %v3019_v8 = vcombine.low %v962_v49, %v966_v50 }
  0x8c   : > { %3144 = vmatpush3.bf16.msra.mxu0 %v3565_v21  ;;  %v3586_v55 = vld [vmem:[%s4173_s24 + $0x180] sm:$0xff]   ;;  %v3588_v60 = vld [vmem:[%s4173_s24 + $0x1c8] sm:$0xff]   ;;  %v3594_v10 = vld [vmem:[%s4173_s24 + $0x190] sm:$0xff]  }
  0x8d   : > { %3208 = vmatpush3.bf16.msra.mxu1 %v3566_v22  ;;  %3145 = vmatprep.subr.bf16.mxu0 %v3567_v23  ;;  %v3589_v61 = vld [vmem:[%s4173_s24 + $0x108] sm:$0xff]   ;;  %v969_v62 = vld [vmem:[%s4679_s1 + $0xc0] sm:$0xff]  ;;  %v3595_v12 = vld [vmem:[%s4173_s24 + $0x158] sm:$0xff]  }
  0x8e   : > { %3209 = vmatprep.subr.bf16.mxu1 %v3568_v24  ;;  %v3590_v63 = vld [vmem:[%s4173_s24 + $0x188] sm:$0xff]   ;;  %v973_v0 = vld [vmem:[%s4679_s1 + $0xe0] sm:$0xff]  ;;  %v3596_v13 = vld [vmem:[%s4173_s24 + $0x1d8] sm:$0xff]  }
  0x8f   : > { %v970_v1 = vld [vmem:[%s4679_s1 + $0xc8] sm:$0xff]  ;;  %v3026_v9 = vcombine.high %v969_v62, %v973_v0  ;;  %v3597_v14 = vld [vmem:[%s4173_s24 + $0x118] sm:$0xff]   ;;  %v977_v16 = vld [vmem:[%s4679_s1 + $0x100] sm:$0xff]  ;;  %v3025_v20 = vcombine.low %v969_v62, %v973_v0 }
  0x90   : > { %3146 = vmatpush3.bf16.msra.mxu0 %v3569_v25  ;;  %v974_v2 = vld [vmem:[%s4679_s1 + $0xe8] sm:$0xff]  ;;  %v3598_v15 = vld [vmem:[%s4173_s24 + $0x198] sm:$0xff]   ;;  %v981_v17 = vld [vmem:[%s4679_s1 + $0x120] sm:$0xff] }
  0x91   : > { %3210 = vmatpush3.bf16.msra.mxu1 %v3570_v26  ;;  %3147 = vmatprep.subr.bf16.mxu0 %v3571_v27  ;;  %v3028_v11 = vcombine.high %v970_v1, %v974_v2  ;;  %v978_v18 = vld [vmem:[%s4679_s1 + $0x108] sm:$0xff]  ;;  %v3599_v21 = vld [vmem:[%s4173_s24 + $0x160] sm:$0xff]   ;;  %v3027_v22 = vcombine.low %v970_v1, %v974_v2  ;;  %v3034_v23 = vcombine.high %v977_v16, %v981_v17  ;;  %v3607_v39 = vld [vmem:[%s4173_s24 + $0x170] sm:$0xff]  }
  0x92   : > { %3211 = vmatprep.subr.bf16.mxu1 %v3572_v28  ;;  %v982_v19 = vld [vmem:[%s4679_s1 + $0x128] sm:$0xff]  ;;  %v3600_v24 = vld [vmem:[%s4173_s24 + $0x1e0] sm:$0xff]   ;;  %v3033_v36 = vcombine.low %v977_v16, %v981_v17  ;;  %v3611_v48 = vld [vmem:[%s4173_s24 + $0x178] sm:$0xff]  }
  0x93   : > { %v3036_v25 = vcombine.high %v978_v18, %v982_v19  ;;  %v3601_v26 = vld [vmem:[%s4173_s24 + $0x120] sm:$0xff]   ;;  %v3606_v35 = vld [vmem:[%s4173_s24 + $0x1a8] sm:$0xff]   ;;  %v3612_v49 = vld [vmem:[%s4173_s24 + $0x1f8] sm:$0xff]  }
  0x94   : > { %3148 = vmatpush3.bf16.msra.mxu0 %v3573_v29  ;;  %v3602_v27 = vld [vmem:[%s4173_s24 + $0x1a0] sm:$0xff]   ;;  %v998_v47 = vld [vmem:[%s4679_s1 + $0x1a8] sm:$0xff]  ;;  %v3613_v50 = vld [vmem:[%s4173_s24 + $0x138] sm:$0xff]  }
  0x95   : > { %3212 = vmatpush3.bf16.msra.mxu1 %v3574_v30  ;;  %3149 = vmatprep.subr.bf16.mxu0 %v3575_v31  ;;  %v985_v28 = vld [vmem:[%s4679_s1 + $0x140] sm:$0xff]  ;;  %v3603_v30 = vld [vmem:[%s4173_s24 + $0x168] sm:$0xff]   ;;  %v1140_v0 = vld [vmem:[%s4680_s2 + $0x18] sm:$0xff] }
  0x96   : > { %3213 = vmatprep.subr.bf16.mxu1 %v3576_v32  ;;  %v989_v29 = vld [vmem:[%s4679_s1 + $0x160] sm:$0xff]  ;;  %v3604_v31 = vld [vmem:[%s4173_s24 + $0x1e8] sm:$0xff]  }
  0x97   : > { %v3605_v32 = vld [vmem:[%s4173_s24 + $0x128] sm:$0xff]   ;;  %v3042_v38 = vcombine.high %v985_v28, %v989_v29  ;;  %v4366_v17 = vld [vmem:[%s4686_s8] sm:$0xf] }
  0x98   : > { %3150 = vmatpush3.bf16.msra.mxu0 %v3577_v33  ;;  %v986_v33 = vld [vmem:[%s4679_s1 + $0x148] sm:$0xff]  ;;  %vm2532_vm2 = vcmp.ne.f32.partialorder %v4366_v17, %v4366_v17 }
  0x99   : > { %3214 = vmatpush3.bf16.msra.mxu1 %v3578_v34  ;;  %3151 = vmatprep.subr.bf16.mxu0 %v3579_v37  ;;  %v990_v34 = vld [vmem:[%s4679_s1 + $0x168] sm:$0xff]  ;;  %v3035_v37 = vcombine.low %v978_v18, %v982_v19  ;;  %v4371_v18 = vld [vmem:[%s4687_s9] sm:$0xf] }
  0x9a   : > { %3215 = vmatprep.subr.bf16.mxu1 %v3580_v40  ;;  %v3044_v40 = vcombine.high %v986_v33, %v990_v34  ;;  %v1138_v62 = vld [vmem:[%s4680_s2 + $0x8] sm:$0xff]  ;;  %v1145_v19 = vld [vmem:[%s4680_s2 + $0x40] sm:$0xff]  ;;  %vm2552_vm3 = vcmp.ne.f32.partialorder %v4371_v18, %v4371_v18 }
  0x9c   : > { %3152 = vmatpush3.bf16.msra.mxu0 %v3581_v41  ;;  %v3608_v41 = vld [vmem:[%s4173_s24 + $0x1f0] sm:$0xff]  }
  0x9d   : > { %3216 = vmatpush3.bf16.msra.mxu1 %v3582_v42  ;;  %3265 = vmatprep.subr.bf16.mxu0 %v3583_v51  ;;  %v3609_v42 = vld [vmem:[%s4173_s24 + $0x130] sm:$0xff]   ;;  %v3041_v51 = vcombine.low %v985_v28, %v989_v29  ;;  %v960_v28 = vld [vmem:[%s4679_s1 + $0x78] sm:$0xff] }
  0x9e   : > { %3329 = vmatprep.subr.bf16.mxu1 %v3584_v52  ;;  %v3614_v52 = vld [vmem:[%s4173_s24 + $0x1b8] sm:$0xff]   ;;  %v1147_v29 = vld [vmem:[%s4680_s2 + $0x50] sm:$0xff] }
  0x9f   : > { %1970 = vmatmul.mubr.bf16.vlgmr.msra.gmra.mrb[0].mxu0 %v3001_v43  ;;  %v993_v43 = vld [vmem:[%s4679_s1 + $0x180] sm:$0xff] }
  0xa0   : > { %2067 = vmatmul.mubr.bf16.vlgmr.msra.gmra.mrb[0].mxu1 %v3003_v44  ;;  %1977 = vmatprep.mubr.bf16.mxu0 %v3010_v45  ;;  %v997_v44 = vld [vmem:[%s4679_s1 + $0x1a0] sm:$0xff]  ;;  %v3610_v45 = vld [vmem:[%s4173_s24 + $0x1b0] sm:$0xff]  }
  0xa1   : > { %2074 = vmatprep.mubr.bf16.mxu1 %v3012_v46  ;;  %3266 = vmatpush3.bf16.msra.mxu0 %v3585_v53  ;;  %v994_v46 = vld [vmem:[%s4679_s1 + $0x188] sm:$0xff]  ;;  %v3043_v53 = vcombine.low %v986_v33, %v990_v34 }
  0xa2   : > { %3330 = vmatpush3.bf16.msra.mxu1 %v3586_v55  ;;  %3267 = vmatprep.subr.bf16.mxu0 %v3587_v58  ;;  %v3052_v55 = vcombine.high %v994_v46, %v998_v47  ;;  %v1005_v58 = vld [vmem:[%s4679_s1 + $0x1e0] sm:$0xff]  ;;  %v3051_v1 = vcombine.low %v994_v46, %v998_v47 }
  0xa3   : > { %3331 = vmatprep.subr.bf16.mxu1 %v3588_v60  ;;  %v1002_v60 = vld [vmem:[%s4679_s1 + $0x1c8] sm:$0xff] }
  0xa5   : > { %3268 = vmatpush3.bf16.msra.mxu0 %v3589_v61  ;;  %v1006_v61 = vld [vmem:[%s4679_s1 + $0x1e8] sm:$0xff] }
  0xa6   : > { %3332 = vmatpush3.bf16.msra.mxu1 %v3590_v63  ;;  %3269 = vmatprep.subr.bf16.mxu0 %v3591_v3  ;;  %v3049_v63 = vcombine.low %v993_v43, %v997_v44  ;;  %v3060_v3 = vcombine.high %v1002_v60, %v1006_v61 }
  0xa7   : > { %1978 = vmatmul.mubr.bf16.gmra.mrb[4].mxu0 %v3009_v54  ;;  %3333 = vmatprep.subr.bf16.mxu1 %v3592_v4  ;;  %v3050_v54 = vcombine.high %v993_v43, %v997_v44  ;;  %v1141_v4 = vld [vmem:[%s4680_s2 + $0x20] sm:$0xff]  ;;  %v1151_v43 = vld [vmem:[%s4680_s2 + $0x70] sm:$0xff] }
  0xa8   : > { %2075 = vmatmul.mubr.bf16.gmra.mrb[4].mxu1 %v3011_v56  ;;  %1985 = vmatprep.mubr.bf16.mxu0 %v3018_v57  ;;  %v1137_v56 = vld [vmem:[%s4680_s2] sm:$0xff] }
  0xa9   : > { %2082 = vmatprep.mubr.bf16.mxu1 %v3020_v59  ;;  %3270 = vmatpush3.bf16.msra.mxu0 %v3593_v7  ;;  %v1001_v57 = vld [vmem:[%s4679_s1 + $0x1c0] sm:$0xff]  ;;  %v1139_v59 = vld [vmem:[%s4680_s2 + $0x10] sm:$0xff] }
  0xaa   : > { %3334 = vmatpush3.bf16.msra.mxu1 %v3594_v10  ;;  %3271 = vmatprep.subr.bf16.mxu0 %v3595_v12  ;;  %v3058_v2 = vcombine.high %v1001_v57, %v1005_v58  ;;  %v947_v7 = vld [vmem:[%s4679_s1 + $0x10] sm:$0xff]  ;;  %v952_v10 = vld [vmem:[%s4679_s1 + $0x38] sm:$0xff]  ;;  %v3057_v12 = vcombine.low %v1001_v57, %v1005_v58 }
  0xab   : > { %3335 = vmatprep.subr.bf16.mxu1 %v3596_v13  ;;  %1155 = vperm.xlu0 %3542, %v1137_v56   ;;  %v1144_v13 = vld [vmem:[%s4680_s2 + $0x38] sm:$0xff]  ;;  %v975_v56 = vld [vmem:[%s4679_s1 + $0xf0] sm:$0xff] }
  0xac   : > { %1165 = vperm.xlu1 %3543, %v1139_v59   ;;  %v972_v57 = vld [vmem:[%s4679_s1 + $0xd8] sm:$0xff]  ;;  %v4444_v59 = vld [vmem:[%s4685_s7] sm:$0xff] }
  0xad   : > { %3272 = vmatpush3.bf16.msra.mxu0 %v3597_v14  ;;  %v3059_v14 = vcombine.low %v1002_v60, %v1006_v61  ;;  %v976_v58 = vld [vmem:[%s4679_s1 + $0xf8] sm:$0xff] }
  0xae   : > { %3336 = vmatpush3.bf16.msra.mxu1 %v3598_v15  ;;  %3273 = vmatprep.subr.bf16.mxu0 %v3599_v21  ;;  %v1146_v21 = vld [vmem:[%s4680_s2 + $0x48] sm:$0xff] }
  0xaf   : > { %1986 = vmatmul.mubr.bf16.gmra.mrb[8].mxu0 %v3017_v6  ;;  %3337 = vmatprep.subr.bf16.mxu1 %v3600_v24  ;;  %v1142_v6 = vld [vmem:[%s4680_s2 + $0x28] sm:$0xff]  ;;  %v955_v24 = vld [vmem:[%s4679_s1 + $0x50] sm:$0xff] }
  0xb0   : > { %2083 = vmatmul.mubr.bf16.gmra.mrb[8].mxu1 %v3019_v8  ;;  %1993 = vmatprep.mubr.bf16.mxu0 %v3026_v9  ;;  %v951_v8 = vld [vmem:[%s4679_s1 + $0x30] sm:$0xff]  ;;  %v948_v9 = vld [vmem:[%s4679_s1 + $0x18] sm:$0xff] }
  0xb1   : > { %2090 = vmatprep.mubr.bf16.mxu1 %v3028_v11  ;;  %3274 = vmatpush3.bf16.msra.mxu0 %v3601_v26  ;;  %v1143_v11 = vld [vmem:[%s4680_s2 + $0x30] sm:$0xff]  ;;  %v3006_v15 = vcombine.high %v947_v7, %v951_v8  ;;  %v3008_v16 = vcombine.high %v948_v9, %v952_v10  ;;  %v3007_v34 = vcombine.low %v948_v9, %v952_v10 }
  0xb2   : > { %3338 = vmatpush3.bf16.msra.mxu1 %v3602_v27  ;;  %3275 = vmatprep.subr.bf16.mxu0 %v3603_v30  ;;  %v956_v27 = vld [vmem:[%s4679_s1 + $0x58] sm:$0xff]  ;;  %v983_v9 = vld [vmem:[%s4679_s1 + $0x130] sm:$0xff] }
  0xb3   : > { %3339 = vmatprep.subr.bf16.mxu1 %v3604_v31  ;;  %1160 = vperm.xlu0 %3542, %v1138_v62   ;;  %v3005_v31 = vcombine.low %v947_v7, %v951_v8  ;;  %v3015_v46 = vcombine.low %v956_v27, %v960_v28  ;;  %v4449_v62 = vld [vmem:[%s4685_s7 + $0x8] sm:$0xff]  ;;  %v979_v8 = vld [vmem:[%s4679_s1 + $0x110] sm:$0xff] }
  0xb4   : > { %1170 = vperm.xlu1 %3543, %v1140_v0  }
  0xb5   : > { %3276 = vmatpush3.bf16.msra.mxu0 %v3605_v32  ;;  %v1148_v32 = vld [vmem:[%s4680_s2 + $0x58] sm:$0xff] }
  0xb6   : > { %3340 = vmatpush3.bf16.msra.mxu1 %v3606_v35  ;;  %3277 = vmatprep.subr.bf16.mxu0 %v3607_v39  ;;  %v963_v39 = vld [vmem:[%s4679_s1 + $0x90] sm:$0xff] }
  0xb7   : > { %1994 = vmatmul.mubr.bf16.gmra.mrb[12].mxu0 %v3025_v20  ;;  %3341 = vmatprep.subr.bf16.mxu1 %v3608_v41  ;;  %v2534_v20 = vand.u32 2147483647, %v4366_v17  ;;  %v964_v41 = vld [vmem:[%s4679_s1 + $0x98] sm:$0xff] }
  0xb8   : > { %2091 = vmatmul.mubr.bf16.gmra.mrb[12].mxu1 %v3027_v22  ;;  %2001 = vmatprep.mubr.bf16.mxu0 %v3034_v23  ;;  %v2554_v22 = vand.u32 2147483647, %v4371_v18 }
  0xb9   : > { %2098 = vmatprep.mubr.bf16.mxu1 %v3036_v25  ;;  %3278 = vmatpush3.bf16.msra.mxu0 %v3609_v42  ;;  %v2535_v23 = vsub.f32 0.0, %v2534_v20  ;;  %v959_v25 = vld [vmem:[%s4679_s1 + $0x70] sm:$0xff]  ;;  %v968_v42 = vld [vmem:[%s4679_s1 + $0xb8] sm:$0xff] }
  0xba   : > { %3342 = vmatpush3.bf16.msra.mxu1 %v3610_v45  ;;  %3279 = vmatprep.subr.bf16.mxu0 %v3611_v48  ;;  %v2555_v26 = vsub.f32 0.0, %v2554_v22  ;;  %v3014_v35 = vcombine.high %v955_v24, %v959_v25  ;;  %v3013_v44 = vcombine.low %v955_v24, %v959_v25  ;;  %v1152_v45 = vld [vmem:[%s4680_s2 + $0x78] sm:$0xff]  ;;  %v3024_v48 = vcombine.high %v964_v41, %v968_v42 }
  0xbb   : > { %3343 = vmatprep.subr.bf16.mxu1 %v3612_v49  ;;  %1175 = vperm.xlu0 %3542, %v1141_v4   ;;  %v2536_v30 = vmul.f32 1.442695, %v2535_v23  ;;  %v3023_v0 = vcombine.low %v964_v41, %v968_v42  ;;  %v2551_v23 = vmax.f32 %v4371_v18, 0.0  ;;  %v999_v42 = vld [vmem:[%s4679_s1 + $0x1b0] sm:$0xff] }
  0xbc   : > { %1180 = vperm.xlu1 %3543, %v1142_v6   ;;  %v2556_v33 = vmul.f32 1.442695, %v2555_v26 }
  0xbd   : > { %3280 = vmatpush3.bf16.msra.mxu0 %v3613_v50  ;;  %3615 = vpow2.f32 %v2536_v30  ;;  %v2343_v50 = vld [vmem:[%s4682_s4] sm:$0xff]  ;;  %v987_v30 = vld [vmem:[%s4679_s1 + $0x150] sm:$0xff] }
  0xbe   : > { %3344 = vmatpush3.bf16.msra.mxu1 %v3614_v52  ;;  %3617 = vpow2.f32 %v2556_v33  ;;  %v2344_v52 = vld [vmem:[%s4682_s4 + $0x8] sm:$0xff]  ;;  %v988_v33 = vld [vmem:[%s4679_s1 + $0x158] sm:$0xff] }
  0xbf   : > { %2002 = vmatmul.mubr.bf16.gmra.mrb[16].mxu0 %v3033_v36  ;;  %1185 = vperm.xlu0 %3542, %v1143_v11   ;;  %v3016_v36 = vcombine.high %v956_v27, %v960_v28  ;;  %v980_v11 = vld [vmem:[%s4679_s1 + $0x118] sm:$0xff] }
  0xc0   : > { %2099 = vmatmul.mubr.bf16.gmra.mrb[16].mxu1 %v3035_v37  ;;  %2009 = vmatprep.mubr.bf16.mxu0 %v3042_v38  ;;  %v1149_v37 = vld [vmem:[%s4680_s2 + $0x60] sm:$0xff]  ;;  %v1150_v38 = vld [vmem:[%s4680_s2 + $0x68] sm:$0xff] }
  0xc1   : > { %2106 = vmatprep.mubr.bf16.mxu1 %v3044_v40  ;;  %1190 = vperm.xlu1 %3543, %v1144_v13   ;;  %v967_v40 = vld [vmem:[%s4679_s1 + $0xb0] sm:$0xff] }
  0xc2   : > { %v3022_v47 = vcombine.high %v963_v39, %v967_v40  ;;  %v3021_v61 = vcombine.low %v963_v39, %v967_v40 }
  0xc3   : > { %1195 = vperm.xlu0 %3542, %v1145_v19  }
  0xc5   : > { %1200 = vperm.xlu1 %3543, %v1146_v21   ;;  %v3038_v21 = vcombine.high %v979_v8, %v983_v9 }
  0xc7   : > { %2010 = vmatmul.mubr.bf16.gmra.mrb[20].mxu0 %v3041_v51  ;;  %1205 = vperm.xlu0 %3542, %v1147_v29   ;;  %v3616_v49 = vpop.eup %3615 }
  0xc8   : > { %2107 = vmatmul.mubr.bf16.gmra.mrb[20].mxu1 %v3043_v53  ;;  %2017 = vmatprep.mubr.bf16.mxu0 %v3050_v54  ;;  %v3618_v51 = vpop.eup %3617  ;;  %v2538_v53 = vadd.f32 1.0, %v3616_v49  ;;  %v2541_v60 = vmul.f32 -0.5, %v3616_v49  ;;  %v2544_v4 = vand.u32 2147483647, %v3616_v49 }
  0xc9   : > { %2114 = vmatprep.mubr.bf16.mxu1 %v3052_v55  ;;  %1210 = vperm.xlu1 %3543, %v1148_v32   ;;  %v2558_v54 = vadd.f32 1.0, %v3618_v51  ;;  %v971_v55 = vld [vmem:[%s4679_s1 + $0xd0] sm:$0xff]  ;;  %v2564_v7 = vand.u32 2147483647, %v3618_v51 }
  0xca   : > { %3619 = vlog2.f32 %v2538_v53  ;;  %v3029_v10 = vcombine.low %v971_v55, %v975_v56  ;;  %vm2545_vm0 = vcmp.lt.f32.partialorder %v2544_v4, 0.0004427343 }
  0xcb   : > { %1215 = vperm.xlu0 %3542, %v1149_v37   ;;  %3621 = vlog2.f32 %v2558_v54  ;;  %vm2565_vm1 = vcmp.lt.f32.partialorder %v2564_v7, 0.0004427343  ;;  %v3037_v37 = vcombine.low %v979_v8, %v983_v9 }
  0xcd   : > { %1220 = vperm.xlu1 %3543, %v1150_v38  }
  0xcf   : > { %2018 = vmatmul.mubr.bf16.gmra.mrb[24].mxu0 %v3049_v63  ;;  %1225 = vperm.xlu0 %3542, %v1151_v43   ;;  %v2561_v63 = vmul.f32 -0.5, %v3618_v51  ;;  %v1000_v43 = vld [vmem:[%s4679_s1 + $0x1b8] sm:$0xff] }
  0xd0   : > { %2115 = vmatmul.mubr.bf16.gmra.mrb[24].mxu1 %v3051_v1  ;;  %2025 = vmatprep.mubr.bf16.mxu0 %v3058_v2  ;;  %v3030_v1 = vcombine.high %v971_v55, %v975_v56  ;;  %v3032_v2 = vcombine.high %v972_v57, %v976_v58 }
  0xd1   : > { %2122 = vmatprep.mubr.bf16.mxu1 %v3060_v3  ;;  %1230 = vperm.xlu1 %3543, %v1152_v45   ;;  %v2542_v3 = vadd.f32 1.0, %v2541_v60  ;;  %v2562_v6 = vadd.f32 1.0, %v2561_v63 }
  0xd3   : > { %2347 = vperm.xlu0 %3542, %v2343_v50   ;;  %v2543_v13 = vmul.f32 %v3616_v49, %v2542_v3  ;;  %v2563_v19 = vmul.f32 %v3618_v51, %v2562_v6  ;;  %v1007_v49 = vld [vmem:[%s4679_s1 + $0x1f0] sm:$0xff]  ;;  %v1004_v50 = vld [vmem:[%s4679_s1 + $0x1d8] sm:$0xff] }
  0xd4   : > { %v1008_v51 = vld [vmem:[%s4679_s1 + $0x1f8] sm:$0xff] }
  0xd5   : > { %2352 = vperm.xlu1 %3543, %v2344_v52   ;;  %v3064_v55 = vcombine.high %v1004_v50, %v1008_v51 }
  0xd7   : > { %2026 = vmatmul.mubr.bf16.gmra.mrb[28].mxu0 %v3057_v12  ;;  %2572 = vperm.xlu0 %3542, %v4444_v59   ;;  %v984_v12 = vld [vmem:[%s4679_s1 + $0x138] sm:$0xff] }
  0xd8   : > { %2123 = vmatmul.mubr.bf16.gmra.mrb[28].mxu1 %v3059_v14  ;;  %2163 = vmatprep.mubr.bf16.mxu0 %v3006_v15  ;;  %v3620_v14 = vpop.eup %3619  ;;  %v3031_v15 = vcombine.low %v972_v57, %v976_v58  ;;  %v3040_v24 = vcombine.high %v980_v11, %v984_v12  ;;  %v3039_v38 = vcombine.low %v980_v11, %v984_v12 }
  0xd9   : > { %2260 = vmatprep.mubr.bf16.mxu1 %v3008_v16  ;;  %2577 = vperm.xlu1 %3543, %v4449_v62   ;;  %v2531_v16 = vmax.f32 %v4366_v17, 0.0  ;;  %v3622_v20 = vpop.eup %3621  ;;  %v2540_v22 = vmul.f32 0.6931472, %v3620_v14  ;;  %v3063_v57 = vcombine.low %v1004_v50, %v1008_v51 }
  0xda   : > { %v2560_v25 = vmul.f32 0.6931472, %v3622_v20 }
  0xdb   : > { %v2546_v26 = vsel %vm2545_vm0, %v2543_v13, %v2540_v22 }
  0xdc   : > { %v2547_v27 = vadd.f32 %v2546_v26, %v2531_v16  ;;  %v2566_v28 = vsel %vm2565_vm1, %v2563_v19, %v2560_v25 }
  0xdd   : > { %v2567_v29 = vadd.f32 %v2566_v28, %v2551_v23 }
  0xde   : > { %v2548_v32 = vsel %vm2532_vm2, %v4366_v17, %v2547_v27  ;;  %v995_v17 = vld [vmem:[%s4679_s1 + $0x190] sm:$0xff] }
  0xdf   : > { %2164 = vmatmul.mubr.bf16.vlgmr.msra.gmra.mrb[32].mxu0 %v3005_v31  ;;  %v991_v31 = vld [vmem:[%s4679_s1 + $0x170] sm:$0xff]  ;;  %2600 = vperm.xlu0 %3542, %v2548_v32   ;;  %v3053_v52 = vcombine.low %v995_v17, %v999_v42 }
  0xe0   : > { %2261 = vmatmul.mubr.bf16.vlgmr.msra.gmra.mrb[32].mxu1 %v3007_v34  ;;  %2171 = vmatprep.mubr.bf16.mxu0 %v3014_v35  ;;  %v992_v34 = vld [vmem:[%s4679_s1 + $0x178] sm:$0xff]  ;;  %v2549_v35 = vsub.f32 0.0, %v2548_v32  ;;  %v3046_v39 = vcombine.high %v987_v30, %v991_v31 }
  0xe1   : > { %2268 = vmatprep.mubr.bf16.mxu1 %v3016_v36  ;;  %v2568_v36 = vsel %vm2552_vm3, %v4371_v18, %v2567_v29  ;;  %v3048_v41 = vcombine.high %v988_v33, %v992_v34  ;;  %v996_v18 = vld [vmem:[%s4679_s1 + $0x198] sm:$0xff]  ;;  %v3047_v45 = vcombine.low %v988_v33, %v992_v34  ;;  %v3758_v29 = vmov 1  }
  0xe2   : > { %v2569_v40 = vadd.f32 %v2568_v36, %v2549_v35  ;;  %v3055_v53 = vcombine.low %v996_v18, %v1000_v43 }
  0xe3   : > { %3544 = vset.pattern.permute.xlu0 %v3758_v29 }
  0xe4   : > { %2607 = vperm.xlu1 %3543, %v2569_v40   ;;  %2644 = vperm.xlu0 %3544, %v4444_v59   ;;  %v3759_v40 = vmov 2  }
  0xe7   : > { %2172 = vmatmul.mubr.bf16.gmra.mrb[36].mxu0 %v3013_v44  ;;  %v3045_v44 = vcombine.low %v987_v30, %v991_v31 }
  0xe8   : > { %2269 = vmatmul.mubr.bf16.gmra.mrb[36].mxu1 %v3015_v46  ;;  %2179 = vmatprep.mubr.bf16.mxu0 %v3022_v47  ;;  %v3054_v46 = vcombine.high %v995_v17, %v999_v42  ;;  %v3056_v47 = vcombine.high %v996_v18, %v1000_v43 }
  0xe9   : > { %2276 = vmatprep.mubr.bf16.mxu1 %v3024_v48  ;;  %v1003_v48 = vld [vmem:[%s4679_s1 + $0x1d0] sm:$0xff]  ;;  %3545 = vset.pattern.permute.xlu1 %v3758_v29 }
  0xea   : > { %v3062_v54 = vcombine.high %v1003_v48, %v1007_v49  ;;  %v3061_v56 = vcombine.low %v1003_v48, %v1007_v49  ;;  %2648 = vperm.xlu1 %3545, %v4449_v62   ;;  %3547 = vset.pattern.permute.xlu0 %v3759_v40 }
  0xeb   : > { %2715 = vperm.xlu0 %3547, %v4449_v62  }
  0xee   : > { %3546 = vset.pattern.permute.xlu1 %v3759_v40 }
  0xef   : > { %2180 = vmatmul.mubr.bf16.gmra.mrb[40].mxu0 %v3021_v61  ;;  %2711 = vperm.xlu1 %3546, %v4444_v59  }
  0xf0   : > { %2277 = vmatmul.mubr.bf16.gmra.mrb[40].mxu1 %v3023_v0  ;;  %2187 = vmatprep.mubr.bf16.mxu0 %v3030_v1 }
  0xf1   : > { %2284 = vmatprep.mubr.bf16.mxu1 %v3032_v2  ;;  %3549 = vset.pattern.permute.xlu0 %v3757_v5 }
  0xf7   : > { %2188 = vmatmul.mubr.bf16.gmra.mrb[44].mxu0 %v3029_v10 }
  0xf8   : > { %2285 = vmatmul.mubr.bf16.gmra.mrb[44].mxu1 %v3031_v15  ;;  %2195 = vmatprep.mubr.bf16.mxu0 %v3038_v21  ;;  %v2341_v15 = vld [vmem:[%s4681_s3] sm:$0xff] }
  0xf9   : > { %2292 = vmatprep.mubr.bf16.mxu1 %v3040_v24 }
  0xff   : > { %2196 = vmatmul.mubr.bf16.gmra.mrb[48].mxu0 %v3037_v37 }
 0x100   : > { %2293 = vmatmul.mubr.bf16.gmra.mrb[48].mxu1 %v3039_v38  ;;  %2203 = vmatprep.mubr.bf16.mxu0 %v3046_v39 }
 0x101   : > { %2300 = vmatprep.mubr.bf16.mxu1 %v3048_v41 }
 0x107   : > { %2204 = vmatmul.mubr.bf16.gmra.mrb[52].mxu0 %v3045_v44 }
 0x108   : > { %2301 = vmatmul.mubr.bf16.gmra.mrb[52].mxu1 %v3047_v45  ;;  %2211 = vmatprep.mubr.bf16.mxu0 %v3054_v46 }
 0x109   : > { %2308 = vmatprep.mubr.bf16.mxu1 %v3056_v47 }
 0x10f   : > { %2212 = vmatmul.mubr.bf16.gmra.mrb[56].mxu0 %v3053_v52 }
 0x110   : > { %2309 = vmatmul.mubr.bf16.gmra.mrb[56].mxu1 %v3055_v53  ;;  %2219 = vmatprep.mubr.bf16.mxu0 %v3062_v54 }
 0x111   : > { %2316 = vmatprep.mubr.bf16.mxu1 %v3064_v55 }
 0x117   : > { %2220 = vmatmul.mubr.bf16.gmra.mrb[60].mxu0 %v3061_v56 }
 0x118   : > { %2317 = vmatmul.mubr.bf16.gmra.mrb[60].mxu1 %v3063_v57  ;;  %3446 = vmatprep.mubr.f32.mxu0 %v2341_v15 }
 0x12a   : > { %v1156_v58 = vpop.permute.xlu0 %1155 }
 0x12b   : > { %v1166_v60 = vpop.permute.xlu1 %1165 }
 0x132   : > { %v1161_v63 = vpop.permute.xlu0 %1160 }
 0x133   : > { %v1171_v20 = vpop.permute.xlu1 %1170 }
 0x13a   : > { %v1176_v36 = vpop.permute.xlu0 %1175 }
 0x13b   : > { %v1181_v39 = vpop.permute.xlu1 %1180 }
 0x13e   : > { %v1186_v53 = vpop.permute.xlu0 %1185 }
 0x140   : > { %v1191_v56 = vpop.permute.xlu1 %1190 }
 0x172   : > { %v3153_v61 = vpop.f32.mrb[0].mxu0 }
 0x173   : > { %v3217_v0 = vpop.f32.mrb[0].mxu1  ;;  %v3154_v1 = vpop.f32.mrb[1].mxu0 }
 0x174   : > { %v3155_v2 = vadd.f32 %v3154_v1, %v3153_v61  ;;  %v3218_v3 = vpop.f32.mrb[1].mxu1  ;;  %v3156_v4 = vpop.f32.mrb[2].mxu0 }
 0x175   : > { %v3219_v6 = vadd.f32 %v3218_v3, %v3217_v0  ;;  %v3220_v7 = vpop.f32.mrb[2].mxu1  ;;  %v3157_v8 = vpop.f32.mrb[3].mxu0 }
 0x176   : > { %v1972_v9 = vadd.f32 %v3155_v2, %v1156_v58  ;;  %v3158_v10 = vadd.f32 %v3157_v8, %v3156_v4  ;;  %v3221_v11 = vpop.f32.mrb[3].mxu1 }
 0x177   : > { %v3222_v12 = vadd.f32 %v3221_v11, %v3220_v7 }
 0x178   : > { %v4509_v13 = vadd.f32 %v3219_v6, %v1972_v9  ;;  %v1975_v14 = vadd.f32 %v3158_v10, %v1161_v63  ;;  %v1196_v9 = vpop.permute.xlu0 %1195 }
 0x17a   : > { %v4514_v16 = vadd.f32 %v3222_v12, %v1975_v14  ;;  %v3159_v19 = vpop.f32.mrb[4].mxu0  ;;  %v1201_v12 = vpop.permute.xlu1 %1200 }
 0x17b   : > { %v3223_v21 = vpop.f32.mrb[4].mxu1  ;;  %v3160_v22 = vpop.f32.mrb[5].mxu0 }
 0x17c   : > { %v3161_v23 = vadd.f32 %v3160_v22, %v3159_v19  ;;  %v3224_v24 = vpop.f32.mrb[5].mxu1  ;;  %v3162_v25 = vpop.f32.mrb[6].mxu0 }
 0x17d   : > { %v3225_v26 = vadd.f32 %v3224_v24, %v3223_v21  ;;  %v3226_v27 = vpop.f32.mrb[6].mxu1  ;;  %v3163_v28 = vpop.f32.mrb[7].mxu0 }
 0x17e   : > { %v1980_v30 = vadd.f32 %v3161_v23, %v1166_v60  ;;  %v3164_v31 = vadd.f32 %v3163_v28, %v3162_v25  ;;  %v3227_v32 = vpop.f32.mrb[7].mxu1 }
 0x17f   : > { %v3228_v33 = vadd.f32 %v3227_v32, %v3226_v27 }
 0x180   : > { %v4518_v34 = vadd.f32 %v3225_v26, %v1980_v30  ;;  %v1983_v35 = vadd.f32 %v3164_v31, %v1171_v20  ;;  %v1206_v31 = vpop.permute.xlu0 %1205 }
 0x182   : > { %v4520_v37 = vadd.f32 %v3228_v33, %v1983_v35  ;;  %v3165_v38 = vpop.f32.mrb[8].mxu0  ;;  %v1211_v35 = vpop.permute.xlu1 %1210 }
 0x183   : > { %v3229_v41 = vpop.f32.mrb[8].mxu1  ;;  %v3166_v17 = vpop.f32.mrb[9].mxu0 }
 0x184   : > { %v3167_v42 = vadd.f32 %v3166_v17, %v3165_v38  ;;  %v3230_v18 = vpop.f32.mrb[9].mxu1  ;;  %v3168_v43 = vpop.f32.mrb[10].mxu0 }
 0x185   : > { %v3231_v44 = vadd.f32 %v3230_v18, %v3229_v41  ;;  %v3232_v45 = vpop.f32.mrb[10].mxu1  ;;  %v3169_v46 = vpop.f32.mrb[11].mxu0 }
 0x186   : > { %v1988_v47 = vadd.f32 %v3167_v42, %v1176_v36  ;;  %v3170_v48 = vadd.f32 %v3169_v46, %v3168_v43  ;;  %v3233_v49 = vpop.f32.mrb[11].mxu1 }
 0x187   : > { %v3234_v50 = vadd.f32 %v3233_v49, %v3232_v45  ;;  %v1216_v49 = vpop.permute.xlu0 %1215 }
 0x188   : > { %v4525_v51 = vadd.f32 %v3231_v44, %v1988_v47  ;;  %v1991_v52 = vadd.f32 %v3170_v48, %v1181_v39 }
 0x18a   : > { %v4527_v54 = vadd.f32 %v3234_v50, %v1991_v52  ;;  %v3171_v55 = vpop.f32.mrb[12].mxu0 }
 0x18b   : > { %v3235_v57 = vpop.f32.mrb[12].mxu1  ;;  %v3172_v58 = vpop.f32.mrb[13].mxu0 }
 0x18c   : > { %v3173_v60 = vadd.f32 %v3172_v58, %v3171_v55  ;;  %v3236_v61 = vpop.f32.mrb[13].mxu1  ;;  %v3174_v63 = vpop.f32.mrb[14].mxu0 }
 0x18d   : > { %v3237_v0 = vadd.f32 %v3236_v61, %v3235_v57  ;;  %v3238_v1 = vpop.f32.mrb[14].mxu1  ;;  %v3175_v2 = vpop.f32.mrb[15].mxu0 }
 0x18e   : > { %v1996_v3 = vadd.f32 %v3173_v60, %v1186_v53  ;;  %v3176_v4 = vadd.f32 %v3175_v2, %v3174_v63  ;;  %v3239_v6 = vpop.f32.mrb[15].mxu1  ;;  %v1221_v53 = vpop.permute.xlu1 %1220 }
 0x18f   : > { %v3240_v5 = vadd.f32 %v3239_v6, %v3238_v1 }
 0x190   : > { %v4529_v7 = vadd.f32 %v3237_v0, %v1996_v3  ;;  %v1999_v8 = vadd.f32 %v3176_v4, %v1191_v56 }
 0x192   : > { %v4531_v10 = vadd.f32 %v3240_v5, %v1999_v8  ;;  %v3177_v11 = vpop.f32.mrb[16].mxu0  ;;  %v1226_v8 = vpop.permute.xlu0 %1225 }
 0x193   : > { %v3241_v14 = vpop.f32.mrb[16].mxu1  ;;  %v3178_v15 = vpop.f32.mrb[17].mxu0 }
 0x194   : > { %v3179_v19 = vadd.f32 %v3178_v15, %v3177_v11  ;;  %v3242_v20 = vpop.f32.mrb[17].mxu1  ;;  %v3180_v21 = vpop.f32.mrb[18].mxu0 }
 0x195   : > { %v3243_v22 = vadd.f32 %v3242_v20, %v3241_v14  ;;  %v3244_v23 = vpop.f32.mrb[18].mxu1  ;;  %v3181_v24 = vpop.f32.mrb[19].mxu0 }
 0x196   : > { %v2004_v25 = vadd.f32 %v3179_v19, %v1196_v9  ;;  %v3182_v26 = vadd.f32 %v3181_v24, %v3180_v21  ;;  %v3245_v27 = vpop.f32.mrb[19].mxu1 }
 0x197   : > { %v3246_v28 = vadd.f32 %v3245_v27, %v3244_v23 }
 0x198   : > { %v4533_v29 = vadd.f32 %v3243_v22, %v2004_v25  ;;  %v2007_v30 = vadd.f32 %v3182_v26, %v1201_v12  ;;  %v1231_v12 = vpop.permute.xlu1 %1230 }
 0x19a   : > { %v4535_v32 = vadd.f32 %v3246_v28, %v2007_v30  ;;  %v3183_v33 = vpop.f32.mrb[20].mxu0 }
 0x19b   : > { %v3247_v36 = vpop.f32.mrb[20].mxu1  ;;  %v3184_v38 = vpop.f32.mrb[21].mxu0 }
 0x19c   : > { %v3185_v39 = vadd.f32 %v3184_v38, %v3183_v33  ;;  %v3248_v40 = vpop.f32.mrb[21].mxu1  ;;  %v3186_v41 = vpop.f32.mrb[22].mxu0 }
 0x19d   : > { %v3249_v17 = vadd.f32 %v3248_v40, %v3247_v36  ;;  %v3250_v42 = vpop.f32.mrb[22].mxu1  ;;  %v3187_v18 = vpop.f32.mrb[23].mxu0 }
 0x19e   : > { %v2012_v43 = vadd.f32 %v3185_v39, %v1206_v31  ;;  %v3188_v44 = vadd.f32 %v3187_v18, %v3186_v41  ;;  %v3251_v45 = vpop.f32.mrb[23].mxu1 }
 0x19f   : > { %v3252_v46 = vadd.f32 %v3251_v45, %v3250_v42 }
 0x1a0   : > { %v4537_v47 = vadd.f32 %v3249_v17, %v2012_v43  ;;  %v2015_v48 = vadd.f32 %v3188_v44, %v1211_v35 }
 0x1a2   : > { %v4539_v50 = vadd.f32 %v3252_v46, %v2015_v48  ;;  %v3189_v52 = vpop.f32.mrb[24].mxu0 }
 0x1a3   : > { %v3253_v55 = vpop.f32.mrb[24].mxu1  ;;  %v3190_v56 = vpop.f32.mrb[25].mxu0 }
 0x1a4   : > { %v3191_v57 = vadd.f32 %v3190_v56, %v3189_v52  ;;  %v3254_v58 = vpop.f32.mrb[25].mxu1  ;;  %v3192_v60 = vpop.f32.mrb[26].mxu0 }
 0x1a5   : > { %v3255_v61 = vadd.f32 %v3254_v58, %v3253_v55  ;;  %v3256_v63 = vpop.f32.mrb[26].mxu1  ;;  %v3193_v0 = vpop.f32.mrb[27].mxu0 }
 0x1a6   : > { %v2020_v1 = vadd.f32 %v3191_v57, %v1216_v49  ;;  %v3194_v2 = vadd.f32 %v3193_v0, %v3192_v60  ;;  %v3257_v3 = vpop.f32.mrb[27].mxu1 }
 0x1a7   : > { %v3258_v4 = vadd.f32 %v3257_v3, %v3256_v63 }
 0x1a8   : > { %v4541_v6 = vadd.f32 %v3255_v61, %v2020_v1  ;;  %v2023_v5 = vadd.f32 %v3194_v2, %v1221_v53 }
 0x1aa   : > { %v4543_v9 = vadd.f32 %v3258_v4, %v2023_v5  ;;  %v3195_v11 = vpop.f32.mrb[28].mxu0 }
 0x1ab   : > { %v3259_v14 = vpop.f32.mrb[28].mxu1  ;;  %v3196_v15 = vpop.f32.mrb[29].mxu0 }
 0x1ac   : > { %v3197_v19 = vadd.f32 %v3196_v15, %v3195_v11  ;;  %v3260_v20 = vpop.f32.mrb[29].mxu1  ;;  %v3198_v21 = vpop.f32.mrb[30].mxu0 }
 0x1ad   : > { %v3261_v22 = vadd.f32 %v3260_v20, %v3259_v14  ;;  %v3262_v23 = vpop.f32.mrb[30].mxu1  ;;  %v3199_v24 = vpop.f32.mrb[31].mxu0 }
 0x1ae   : > { %v2028_v25 = vadd.f32 %v3197_v19, %v1226_v8  ;;  %v3200_v26 = vadd.f32 %v3199_v24, %v3198_v21  ;;  %v3263_v27 = vpop.f32.mrb[31].mxu1 }
 0x1af   : > { %v3264_v28 = vadd.f32 %v3263_v27, %v3262_v23 }
 0x1b0   : > { %v4545_v30 = vadd.f32 %v3261_v22, %v2028_v25  ;;  %v2031_v31 = vadd.f32 %v3200_v26, %v1231_v12 }
 0x1b2   : > { %v4547_v33 = vadd.f32 %v3264_v28, %v2031_v31  ;;  %v3281_v35 = vpop.f32.mrb[32].mxu0 }
 0x1b3   : > { %v3345_v36 = vpop.f32.mrb[32].mxu1  ;;  %v3282_v38 = vpop.f32.mrb[33].mxu0 }
 0x1b4   : > { %v3283_v39 = vadd.f32 %v3282_v38, %v3281_v35  ;;  %v3346_v40 = vpop.f32.mrb[33].mxu1  ;;  %v3284_v41 = vpop.f32.mrb[34].mxu0 }
 0x1b5   : > { %v3347_v17 = vadd.f32 %v3346_v40, %v3345_v36  ;;  %v3348_v42 = vpop.f32.mrb[34].mxu1  ;;  %v3285_v18 = vpop.f32.mrb[35].mxu0 }
 0x1b6   : > { %v2166_v43 = vadd.f32 %v3283_v39, %v4509_v13  ;;  %v3286_v44 = vadd.f32 %v3285_v18, %v3284_v41  ;;  %v3349_v45 = vpop.f32.mrb[35].mxu1 }
 0x1b7   : > { %v3350_v46 = vadd.f32 %v3349_v45, %v3348_v42 }
 0x1b8   : > { %v2263_v48 = vadd.f32 %v3347_v17, %v2166_v43  ;;  %v2169_v49 = vadd.f32 %v3286_v44, %v4514_v16 }
 0x1ba   : > { %v2266_v52 = vadd.f32 %v3350_v46, %v2169_v49  ;;  %v3287_v53 = vpop.f32.mrb[36].mxu0  ;;  %v2325_v57 = vmax.f32 %v2263_v48, 0.0 }
 0x1bb   : > { %v3351_v55 = vpop.f32.mrb[36].mxu1  ;;  %v3288_v56 = vpop.f32.mrb[37].mxu0 }
 0x1bc   : > { %v2326_v58 = vmax.f32 %v2266_v52, 0.0  ;;  %v3289_v60 = vadd.f32 %v3288_v56, %v3287_v53  ;;  %v3352_v61 = vpop.f32.mrb[37].mxu1  ;;  %v3290_v63 = vpop.f32.mrb[38].mxu0 }
 0x1bd   : > { %v3353_v0 = vadd.f32 %v3352_v61, %v3351_v55  ;;  %v3354_v1 = vpop.f32.mrb[38].mxu1  ;;  %v3291_v2 = vpop.f32.mrb[39].mxu0 }
 0x1be   : > { %v2174_v13 = vadd.f32 %v3289_v60, %v4518_v34  ;;  %v3292_v3 = vadd.f32 %v3291_v2, %v3290_v63  ;;  %v3355_v4 = vpop.f32.mrb[39].mxu1  ;;  %v3456_v5 = vpack.c.bf16 %v2326_v58, %v2325_v57 }
 0x1bf   : > { %v3356_v8 = vadd.f32 %v3355_v4, %v3354_v1 }
 0x1c0   : > { %v2271_v11 = vadd.f32 %v3353_v0, %v2174_v13  ;;  %v2177_v16 = vadd.f32 %v3292_v3, %v4520_v37  ;;  %3457 = vmatprep.subr.bf16.mxu0 %v3456_v5 }
 0x1c1   : > { %3459 = vmatpush3.bf16.msra.mxu0 %v3456_v5 }
 0x1c2   : > { %v2274_v12 = vadd.f32 %v3356_v8, %v2177_v16  ;;  %v3293_v14 = vpop.f32.mrb[40].mxu0  ;;  %v2327_v20 = vmax.f32 %v2271_v11, 0.0 }
 0x1c3   : > { %v3357_v15 = vpop.f32.mrb[40].mxu1  ;;  %v3294_v19 = vpop.f32.mrb[41].mxu0 }
 0x1c4   : > { %v2328_v21 = vmax.f32 %v2274_v12, 0.0  ;;  %v3295_v22 = vadd.f32 %v3294_v19, %v3293_v14  ;;  %v3358_v23 = vpop.f32.mrb[41].mxu1  ;;  %v3296_v24 = vpop.f32.mrb[42].mxu0 }
 0x1c5   : > { %v3359_v25 = vadd.f32 %v3358_v23, %v3357_v15  ;;  %v3360_v34 = vpop.f32.mrb[42].mxu1  ;;  %v3297_v26 = vpop.f32.mrb[43].mxu0 }
 0x1c6   : > { %v2182_v27 = vadd.f32 %v3295_v22, %v4525_v51  ;;  %v3298_v28 = vadd.f32 %v3297_v26, %v3296_v24  ;;  %v3361_v31 = vpop.f32.mrb[43].mxu1  ;;  %v3460_v35 = vpack.c.bf16 %v2328_v21, %v2327_v20 }
 0x1c7   : > { %v3362_v37 = vadd.f32 %v3361_v31, %v3360_v34 }
 0x1c8   : > { %v2279_v36 = vadd.f32 %v3359_v25, %v2182_v27  ;;  %v2185_v38 = vadd.f32 %v3298_v28, %v4527_v54  ;;  %3461 = vmatprep.subr.bf16.mxu0 %v3460_v35 }
 0x1c9   : > { %3463 = vmatpush3.bf16.msra.mxu0 %v3460_v35 }
 0x1ca   : > { %v2282_v39 = vadd.f32 %v3362_v37, %v2185_v38  ;;  %v3299_v40 = vpop.f32.mrb[44].mxu0  ;;  %v2329_v42 = vmax.f32 %v2279_v36, 0.0 }
 0x1cb   : > { %v3363_v41 = vpop.f32.mrb[44].mxu1  ;;  %v3300_v17 = vpop.f32.mrb[45].mxu0 }
 0x1cc   : > { %v2330_v18 = vmax.f32 %v2282_v39, 0.0  ;;  %v3301_v43 = vadd.f32 %v3300_v17, %v3299_v40  ;;  %v3364_v44 = vpop.f32.mrb[45].mxu1  ;;  %v3302_v45 = vpop.f32.mrb[46].mxu0 }
 0x1cd   : > { %v3365_v46 = vadd.f32 %v3364_v44, %v3363_v41  ;;  %v3366_v51 = vpop.f32.mrb[46].mxu1  ;;  %v3303_v48 = vpop.f32.mrb[47].mxu0 }
 0x1ce   : > { %v2190_v49 = vadd.f32 %v3301_v43, %v4529_v7  ;;  %v3304_v52 = vadd.f32 %v3303_v48, %v3302_v45  ;;  %v3367_v53 = vpop.f32.mrb[47].mxu1  ;;  %v3464_v55 = vpack.c.bf16 %v2330_v18, %v2329_v42 }
 0x1cf   : > { %v3368_v54 = vadd.f32 %v3367_v53, %v3366_v51 }
 0x1d0   : > { %v2287_v56 = vadd.f32 %v3365_v46, %v2190_v49  ;;  %v2193_v57 = vadd.f32 %v3304_v52, %v4531_v10  ;;  %3465 = vmatprep.subr.bf16.mxu0 %v3464_v55 }
 0x1d1   : > { %3467 = vmatpush3.bf16.msra.mxu0 %v3464_v55 }
 0x1d2   : > { %v2290_v58 = vadd.f32 %v3368_v54, %v2193_v57  ;;  %v3305_v60 = vpop.f32.mrb[48].mxu0  ;;  %v2331_v0 = vmax.f32 %v2287_v56, 0.0 }
 0x1d3   : > { %v3369_v61 = vpop.f32.mrb[48].mxu1  ;;  %v3306_v63 = vpop.f32.mrb[49].mxu0 }
 0x1d4   : > { %v2332_v1 = vmax.f32 %v2290_v58, 0.0  ;;  %v3307_v2 = vadd.f32 %v3306_v63, %v3305_v60  ;;  %v3370_v13 = vpop.f32.mrb[49].mxu1  ;;  %v3308_v3 = vpop.f32.mrb[50].mxu0 }
 0x1d5   : > { %v3371_v4 = vadd.f32 %v3370_v13, %v3369_v61  ;;  %v3372_v7 = vpop.f32.mrb[50].mxu1  ;;  %v3309_v5 = vpop.f32.mrb[51].mxu0 }
 0x1d6   : > { %v2198_v8 = vadd.f32 %v3307_v2, %v4533_v29  ;;  %v3310_v11 = vadd.f32 %v3309_v5, %v3308_v3  ;;  %v3373_v16 = vpop.f32.mrb[51].mxu1  ;;  %v3468_v12 = vpack.c.bf16 %v2332_v1, %v2331_v0 }
 0x1d7   : > { %v3374_v10 = vadd.f32 %v3373_v16, %v3372_v7 }
 0x1d8   : > { %v2295_v14 = vadd.f32 %v3371_v4, %v2198_v8  ;;  %v2201_v15 = vadd.f32 %v3310_v11, %v4535_v32  ;;  %3469 = vmatprep.subr.bf16.mxu0 %v3468_v12 }
 0x1d9   : > { %3471 = vmatpush3.bf16.msra.mxu0 %v3468_v12 }
 0x1da   : > { %v2298_v19 = vadd.f32 %v3374_v10, %v2201_v15  ;;  %v3311_v20 = vpop.f32.mrb[52].mxu0  ;;  %v2333_v23 = vmax.f32 %v2295_v14, 0.0 }
 0x1db   : > { %v3375_v21 = vpop.f32.mrb[52].mxu1  ;;  %v3312_v22 = vpop.f32.mrb[53].mxu0 }
 0x1dc   : > { %v2334_v24 = vmax.f32 %v2298_v19, 0.0  ;;  %v3313_v25 = vadd.f32 %v3312_v22, %v3311_v20  ;;  %v3376_v34 = vpop.f32.mrb[53].mxu1  ;;  %v3314_v26 = vpop.f32.mrb[54].mxu0  ;;  %v2342_v20 = vld [vmem:[%s4681_s3 + $0x8] sm:$0xff]  ;;  %v3763_v22 = vmov 3  }
 0x1dd   : > { %v3377_v27 = vadd.f32 %v3376_v34, %v3375_v21  ;;  %v3378_v29 = vpop.f32.mrb[54].mxu1  ;;  %v3315_v28 = vpop.f32.mrb[55].mxu0  ;;  %v3762_v21 = vmov 0.0   ;;  %3548 = vset.pattern.permute.xlu1 %v3763_v22 }
 0x1de   : > { %v2206_v31 = vadd.f32 %v3313_v25, %v4537_v47  ;;  %v3316_v35 = vadd.f32 %v3315_v28, %v3314_v26  ;;  %v3379_v37 = vpop.f32.mrb[55].mxu1  ;;  %v3472_v36 = vpack.c.bf16 %v2334_v24, %v2333_v23  ;;  %3453 = vmatprep.mubr.msk.f32.mxu1 %vm3761_vm4, %v3762_v21  ;;  %2778 = vperm.xlu1 %3548, %v4444_v59   ;;  %v2353_v23 = vpop.permute.xlu1 %2352 }
 0x1df   : > { %v3380_v32 = vadd.f32 %v3379_v37, %v3378_v29  ;;  %v2348_v24 = vpop.permute.xlu0 %2347 }
 0x1e0   : > { %v2303_v38 = vadd.f32 %v3377_v27, %v2206_v31  ;;  %v2209_v39 = vadd.f32 %v3316_v35, %v4539_v50  ;;  %3473 = vmatprep.subr.bf16.mxu0 %v3472_v36 }
 0x1e1   : > { %3475 = vmatpush3.bf16.msra.mxu0 %v3472_v36 }
 0x1e2   : > { %v2306_v40 = vadd.f32 %v3380_v32, %v2209_v39  ;;  %v3317_v41 = vpop.f32.mrb[56].mxu0  ;;  %v2335_v18 = vmax.f32 %v2303_v38, 0.0  ;;  %2782 = vperm.xlu1 %3548, %v4449_v62   ;;  %v2578_v27 = vpop.permute.xlu1 %2577  ;;  %v2430_v62 = vld [vmem:[%s4683_s5] sm:$0xff] }
 0x1e3   : > { %v3381_v17 = vpop.f32.mrb[56].mxu1  ;;  %v3318_v42 = vpop.f32.mrb[57].mxu0 }
 0x1e4   : > { %v2336_v43 = vmax.f32 %v2306_v40, 0.0  ;;  %v3319_v44 = vadd.f32 %v3318_v42, %v3317_v41  ;;  %v3382_v45 = vpop.f32.mrb[57].mxu1  ;;  %v3320_v46 = vpop.f32.mrb[58].mxu0 }
 0x1e5   : > { %v3383_v51 = vadd.f32 %v3382_v45, %v3381_v17  ;;  %v3384_v47 = vpop.f32.mrb[58].mxu1  ;;  %v3321_v48 = vpop.f32.mrb[59].mxu0 }
 0x1e6   : > { %v2214_v49 = vadd.f32 %v3319_v44, %v4541_v6  ;;  %v3322_v52 = vadd.f32 %v3321_v48, %v3320_v46  ;;  %v3385_v53 = vpop.f32.mrb[59].mxu1  ;;  %v3476_v55 = vpack.c.bf16 %v2336_v43, %v2335_v18  ;;  %v2573_v28 = vpop.permute.xlu0 %2572  ;;  %v2611_v48 = vlaneseq }
 0x1e7   : > { %v3386_v50 = vadd.f32 %v3385_v53, %v3384_v47 }
 0x1e8   : > { %v2311_v54 = vadd.f32 %v3383_v51, %v2214_v49  ;;  %v2217_v56 = vadd.f32 %v3322_v52, %v4543_v9  ;;  %3477 = vmatprep.subr.bf16.mxu0 %v3476_v55  ;;  %v4579_v49 = vshrl.u32 %v2611_v48, 7 }
 0x1e9   : > { %3479 = vmatpush3.bf16.msra.mxu0 %v3476_v55  ;;  %v4582_v55 = vpop.permute.xlu1 %2607 }
 0x1ea   : > { %v2314_v57 = vadd.f32 %v3386_v50, %v2217_v56  ;;  %v3323_v58 = vpop.f32.mrb[60].mxu0  ;;  %v2337_v63 = vmax.f32 %v2311_v54, 0.0  ;;  %v4576_v46 = vpop.permute.xlu0 %2600  ;;  %v2613_v52 = vsub.s32 0, %v4579_v49 }
 0x1eb   : > { %v3387_v60 = vpop.f32.mrb[60].mxu1  ;;  %v3324_v61 = vpop.f32.mrb[61].mxu0 }
 0x1ec   : > { %v2338_v0 = vmax.f32 %v2314_v57, 0.0  ;;  %v3325_v1 = vadd.f32 %v3324_v61, %v3323_v58  ;;  %v3388_v2 = vpop.f32.mrb[61].mxu1  ;;  %v3326_v13 = vpop.f32.mrb[62].mxu0 }
 0x1ed   : > { %v3389_v3 = vadd.f32 %v3388_v2, %v3387_v60  ;;  %v3390_v6 = vpop.f32.mrb[62].mxu1  ;;  %v3327_v4 = vpop.f32.mrb[63].mxu0 }
 0x1ee   : > { %v2222_v7 = vadd.f32 %v3325_v1, %v4545_v30  ;;  %v3328_v5 = vadd.f32 %v3327_v4, %v3326_v13  ;;  %v3391_v8 = vpop.f32.mrb[63].mxu1  ;;  %v3480_v11 = vpack.c.bf16 %v2338_v0, %v2337_v63  ;;  %v3760_v30 = vmov 0.0|0.0   ;;  %v2649_v61 = vpop.permute.xlu1 %2648 }
 0x1ef   : > { %v3392_v9 = vadd.f32 %v3391_v8, %v3390_v6  ;;  %3488 = vmatprep.subr.bf16.mxu1 %v3760_v30  ;;  %v2645_v63 = vpop.permute.xlu0 %2644 }
 0x1f0   : > { %v2319_v16 = vadd.f32 %v3389_v3, %v2222_v7  ;;  %v2225_v12 = vadd.f32 %v3328_v5, %v4547_v33  ;;  %3481 = vmatprep.subr.bf16.mxu0 %v3480_v11  ;;  %v2431_v33 = vld [vmem:[%s4684_s6] sm:$0xff] }
 0x1f1   : > { %3483 = vmatpush3.bf16.msra.mxu0 %v3480_v11  ;;  %2434 = vperm.xlu0 %3549, %v2431_v33  }
 0x1f2   : > { %v2322_v10 = vadd.f32 %v3392_v9, %v2225_v12  ;;  %v2339_v14 = vmax.f32 %v2319_v16, 0.0 }
 0x1f4   : > { %v2340_v15 = vmax.f32 %v2322_v10, 0.0 }
 0x1f5   : > { %3550 = vset.pattern.permute.xlu0 %v3763_v22 }
 0x1f6   : > { %v3484_v19 = vpack.c.bf16 %v2340_v15, %v2339_v14 }
 0x1f8   : > { %3485 = vmatprep.subr.bf16.mxu0 %v3484_v19 }
 0x1f9   : > { %3487 = vmatpush3.bf16.msra.mxu0 %v3484_v19 }
 0x1fc   : > { %3447 = vmatmul.mubr.f32.vlgmr.msra.gmra.mrb[64].mxu0 %v2342_v20 }
 0x2cf   : > { %v3448_v25 = vpop.f32.mrb[64].mxu0 }
 0x2d0   : > { %v2427_v34 = vadd.f32 %v3448_v25, %v2353_v23  ;;  %v2421_v26 = vpop.f32.mrb[65].mxu0 }
 0x2d1   : > { %v2422_v29 = vadd.f32 %v2421_v26, %v2348_v24 }
 0x2d2   : > { %v2581_v31 = vsub.f32 %v2427_v34, %v2578_v27 }
 0x2d3   : > { %v3489_v35 = vpack.c.bf16 %v2427_v34, %v2422_v29  ;;  %v2580_v37 = vsub.f32 %v2422_v29, %v2573_v28 }
 0x2d4   : > { %v2583_v59 = vmul.f32 %v2581_v31, %v2581_v31 }
 0x2d5   : > { %v2582_v36 = vmul.f32 %v2580_v37, %v2580_v37  ;;  %3490 = vmatpush3.bf16.msra.mxu1 %v3489_v35 }
 0x2d7   : > { %v2584_v32 = vadd.f32 %v2583_v59, %v2582_v36 }
 0x2d8   : > { %3454 = vmatmul.mubr.msk.f32.vlgmr.msra.gmra.mrb[64].mxu1 %vm2437_vm5, %v2430_v62 }
 0x2d9   : > { %v2585_v38 = vrot.slane %v2584_v32, 4 }
 0x2db   : > { %v2586_v39 = vadd.f32 %v2585_v38, %v2584_v32  ;;  %v2674_v38 = vsub.s32 1, %v4579_v49 }
 0x2dd   : > { %v2587_v40 = vrot.slane %v2586_v39, 2 }
 0x2df   : > { %v2588_v41 = vadd.f32 %v2587_v40, %v2586_v39 }
 0x2e1   : > { %v2589_v17 = vrot.slane %v2588_v41, 1 }
 0x2e3   : > { %v2590_v42 = vadd.f32 %v2589_v17, %v2588_v41 }
 0x2e5   : > { %3623 = vrsqrt.f32 %v2590_v42  ;;  %vm2593_vm6 = vcmp.eq.f32.partialorder %v2590_v42, inf  ;;  %v2596_v44 = vand.u32 2147483648, %v2590_v42  ;;  %vm2595_vm7 = vcmp.eq.f32.partialorder %v2590_v42, 0.0 }
 0x2ef   : > { %v3624_v18 = vpop.eup %3623 }
 0x2f0   : > { %v2592_v43 = vmul.f32 %v3624_v18, %v2590_v42 }
 0x2f2   : > { %v2594_v45 = vsel %vm2593_vm6, %v2590_v42, %v2592_v43 }
 0x2f3   : > { %v2597_v51 = vsel %vm2595_vm7, %v2596_v44, %v2594_v45  ;;  %v2712_v45 = vpop.permute.xlu1 %2711 }
 0x2f4   : > { %v2603_v47 = vadd.f32 %v4576_v46, %v2597_v51 }
 0x2f6   : > { %3625 = vrcp.f32 %v2603_v47 }
 0x300   : > { %v3626_v53 = vpop.eup %3625 }
 0x301   : > { %v2610_v50 = vmul.f32 %v3626_v53, %v4582_v55 }
 0x303   : > { %v2614_v54 = vrot.slane %v2610_v50, %v2613_v52  ;;  %v2619_v56 = vadd.f32 1.0, %v2610_v50  ;;  %v2630_v57 = vmul.f32 %v3626_v53, %v2610_v50  ;;  %v2622_v8 = vmul.f32 -0.5, %v2610_v50 }
 0x304   : > { %v2625_v14 = vand.u32 2147483647, %v2610_v50 }
 0x305   : > { %v2616_v58 = vmul.f32 %v2614_v54, %v2581_v31  ;;  %v2615_v60 = vmul.f32 %v2614_v54, %v2580_v37  ;;  %3627 = vlog2.f32 %v2619_v56  ;;  %v2631_v0 = vmul.f32 %v2630_v57, %v2597_v51  ;;  %v2716_v51 = vpop.permute.xlu0 %2715 }
 0x306   : > { %v2623_v12 = vadd.f32 1.0, %v2622_v8  ;;  %vm2626_vm8 = vcmp.lt.f32.partialorder %v2625_v14, 0.0004427343 }
 0x307   : > { %v2618_v1 = vadd.f32 %v2616_v58, %v2427_v34  ;;  %v2617_v2 = vadd.f32 %v2615_v60, %v2422_v29  ;;  %v2632_v13 = vsub.f32 %v2610_v50, %v2631_v0 }
 0x308   : > { %v2624_v30 = vmul.f32 %v2623_v12, %v2610_v50 }
 0x309   : > { %v2652_v3 = vsub.f32 %v2618_v1, %v2649_v61  ;;  %v2651_v6 = vsub.f32 %v2617_v2, %v2645_v63  ;;  %v2633_v4 = vadd.f32 1.0, %v2632_v13  ;;  %v2636_v10 = vmul.f32 -0.5, %v2632_v13 }
 0x30a   : > { %v2639_v22 = vand.u32 2147483647, %v2632_v13 }
 0x30b   : > { %v2654_v7 = vmul.f32 %v2652_v3, %v2652_v3  ;;  %v2653_v5 = vmul.f32 %v2651_v6, %v2651_v6  ;;  %3629 = vlog2.f32 %v2633_v4  ;;  %v2637_v21 = vadd.f32 1.0, %v2636_v10 }
 0x30c   : > { %vm2640_vm9 = vcmp.lt.f32.partialorder %v2639_v22, 0.0004427343 }
 0x30d   : > { %v2655_v11 = vadd.f32 %v2654_v7, %v2653_v5  ;;  %v2638_v26 = vmul.f32 %v2637_v21, %v2632_v13 }
 0x30f   : > { %v3628_v9 = vpop.eup %3627  ;;  %v2656_v16 = vrot.slane %v2655_v11, 4 }
 0x310   : > { %v2621_v19 = vmul.f32 0.6931472, %v3628_v9 }
 0x311   : > { %v2657_v15 = vadd.f32 %v2656_v16, %v2655_v11 }
 0x312   : > { %v2627_v23 = vsel %vm2626_vm8, %v2624_v30, %v2621_v19 }
 0x313   : > { %v2658_v20 = vrot.slane %v2657_v15, 2  ;;  %v2628_v27 = vmul.f32 15.0, %v2627_v23 }
 0x315   : > { %v2659_v33 = vadd.f32 %v2658_v20, %v2657_v15  ;;  %v3630_v24 = vpop.eup %3629 }
 0x316   : > { %v2635_v34 = vmul.f32 0.6931472, %v3630_v24 }
 0x317   : > { %v2660_v25 = vrot.slane %v2659_v33, 1 }
 0x318   : > { %v2641_v28 = vsel %vm2640_vm9, %v2638_v26, %v2635_v34 }
 0x319   : > { %v2661_v29 = vadd.f32 %v2660_v25, %v2659_v33  ;;  %v2642_v31 = vadd.f32 %v2641_v28, %v2628_v27 }
 0x31b   : > { %3631 = vrsqrt.f32 %v2661_v29  ;;  %vm2664_vm10 = vcmp.eq.f32.partialorder %v2661_v29, inf  ;;  %v2667_v59 = vand.u32 2147483648, %v2661_v29  ;;  %vm2666_vm11 = vcmp.eq.f32.partialorder %v2661_v29, 0.0 }
 0x325   : > { %v3632_v35 = vpop.eup %3631 }
 0x326   : > { %v2663_v37 = vmul.f32 %v3632_v35, %v2661_v29  ;;  %v2779_v35 = vpop.permute.xlu1 %2778 }
 0x328   : > { %v2665_v36 = vsel %vm2664_vm10, %v2661_v29, %v2663_v37  ;;  %v2741_v29 = vsub.s32 2, %v4579_v49 }
 0x329   : > { %v2668_v62 = vsel %vm2666_vm11, %v2667_v59, %v2665_v36 }
 0x32a   : > { %v2669_v32 = vadd.f32 %v2668_v62, %v4576_v46 }
 0x32c   : > { %3633 = vrcp.f32 %v2669_v32 }
 0x336   : > { %v3634_v39 = vpop.eup %3633 }
 0x337   : > { %v2671_v40 = vmul.f32 %v3634_v39, %v4582_v55 }
 0x339   : > { %v2675_v41 = vrot.slane %v2671_v40, %v2674_v38  ;;  %v2694_v17 = vmul.f32 %v3634_v39, %v2671_v40  ;;  %v2680_v42 = vadd.f32 1.0, %v2671_v40  ;;  %v2683_v50 = vmul.f32 -0.5, %v2671_v40 }
 0x33a   : > { %v2686_v0 = vand.u32 2147483647, %v2671_v40 }
 0x33b   : > { %v2676_v18 = vmul.f32 %v2675_v41, %v2651_v6  ;;  %v2695_v43 = vmul.f32 %v2694_v17, %v2668_v62  ;;  %v2677_v44 = vmul.f32 %v2675_v41, %v2652_v3  ;;  %3635 = vlog2.f32 %v2680_v42  ;;  %v2783_v42 = vpop.permute.xlu1 %2782 }
 0x33c   : > { %v2684_v61 = vadd.f32 1.0, %v2683_v50  ;;  %vm2687_vm12 = vcmp.lt.f32.partialorder %v2686_v0, 0.0004427343 }
 0x33d   : > { %v2696_v47 = vsub.f32 %v2671_v40, %v2695_v43  ;;  %v2678_v48 = vadd.f32 %v2676_v18, %v2617_v2  ;;  %v2679_v53 = vadd.f32 %v2677_v44, %v2618_v1 }
 0x33e   : > { %v2685_v7 = vmul.f32 %v2684_v61, %v2671_v40 }
 0x33f   : > { %v2718_v54 = vsub.f32 %v2678_v48, %v2712_v45  ;;  %v2719_v56 = vsub.f32 %v2679_v53, %v2716_v51  ;;  %v2697_v57 = vadd.f32 1.0, %v2696_v47  ;;  %v2700_v13 = vmul.f32 -0.5, %v2696_v47 }
 0x340   : > { %v2703_v9 = vand.u32 2147483647, %v2696_v47 }
 0x341   : > { %v2720_v58 = vmul.f32 %v2718_v54, %v2718_v54  ;;  %v2721_v60 = vmul.f32 %v2719_v56, %v2719_v56  ;;  %3637 = vlog2.f32 %v2697_v57  ;;  %v2701_v2 = vadd.f32 1.0, %v2700_v13 }
 0x342   : > { %vm2704_vm13 = vcmp.lt.f32.partialorder %v2703_v9, 0.0004427343 }
 0x343   : > { %v2722_v63 = vadd.f32 %v2721_v60, %v2720_v58  ;;  %v2702_v15 = vmul.f32 %v2701_v2, %v2696_v47 }
 0x345   : > { %v3636_v6 = vpop.eup %3635  ;;  %v2723_v4 = vrot.slane %v2722_v63, 4 }
 0x346   : > { %v2682_v3 = vmul.f32 0.6931472, %v3636_v6 }
 0x347   : > { %v2724_v5 = vadd.f32 %v2723_v4, %v2722_v63 }
 0x348   : > { %v2688_v8 = vsel %vm2687_vm12, %v2685_v7, %v2682_v3 }
 0x349   : > { %v2725_v1 = vrot.slane %v2724_v5, 2  ;;  %v2689_v11 = vmul.f32 15.0, %v2688_v8 }
 0x34b   : > { %v3638_v16 = vpop.eup %3637  ;;  %v2726_v12 = vadd.f32 %v2725_v1, %v2724_v5  ;;  %v2691_v10 = vrot.slane %v2689_v11, 1 }
 0x34c   : > { %v2699_v14 = vmul.f32 0.6931472, %v3638_v16 }
 0x34d   : > { %v2727_v19 = vrot.slane %v2726_v12, 1  ;;  %v2693_v20 = vadd.f32 %v2691_v10, %v2642_v31 }
 0x34e   : > { %v2705_v30 = vsel %vm2704_vm13, %v2702_v15, %v2699_v14 }
 0x34f   : > { %v2728_v21 = vadd.f32 %v2727_v19, %v2726_v12  ;;  %v2707_v22 = vrot.slane %v2705_v30, 1 }
 0x351   : > { %3639 = vrsqrt.f32 %v2728_v21  ;;  %v2709_v33 = vadd.f32 %v2707_v22, %v2693_v20  ;;  %vm2731_vm14 = vcmp.eq.f32.partialorder %v2728_v21, inf  ;;  %v2734_v25 = vand.u32 2147483648, %v2728_v21 }
 0x352   : > { %vm2733_vm15 = vcmp.eq.f32.partialorder %v2728_v21, 0.0 }
 0x35b   : > { %v3640_v23 = vpop.eup %3639 }
 0x35c   : > { %v2730_v24 = vmul.f32 %v3640_v23, %v2728_v21 }
 0x35e   : > { %v2732_v34 = vsel %vm2731_vm14, %v2728_v21, %v2730_v24  ;;  %v2808_v21 = vsub.s32 3, %v4579_v49 }
 0x35f   : > { %v2735_v26 = vsel %vm2733_vm15, %v2734_v25, %v2732_v34 }
 0x360   : > { %v2736_v27 = vadd.f32 %v2735_v26, %v4576_v46 }
 0x362   : > { %3641 = vrcp.f32 %v2736_v27 }
 0x36c   : > { %v3642_v28 = vpop.eup %3641 }
 0x36d   : > { %v2738_v31 = vmul.f32 %v3642_v28, %v4582_v55 }
 0x36f   : > { %v2742_v37 = vrot.slane %v2738_v31, %v2741_v29  ;;  %v2761_v59 = vmul.f32 %v3642_v28, %v2738_v31  ;;  %v2747_v36 = vadd.f32 1.0, %v2738_v31  ;;  %v2750_v62 = vmul.f32 -0.5, %v2738_v31  ;;  %v2435_v29 = vpop.permute.xlu0 %2434 }
 0x370   : > { %v2753_v57 = vand.u32 2147483647, %v2738_v31 }
 0x371   : > { %v2744_v32 = vmul.f32 %v2742_v37, %v2719_v56  ;;  %v2762_v38 = vmul.f32 %v2761_v59, %v2735_v26  ;;  %v2743_v39 = vmul.f32 %v2742_v37, %v2718_v54  ;;  %3643 = vlog2.f32 %v2747_v36 }
 0x372   : > { %v2751_v40 = vadd.f32 1.0, %v2750_v62  ;;  %vm2754_vm0 = vcmp.lt.f32.partialorder %v2753_v57, 0.0004427343 }
 0x373   : > { %v2763_v41 = vsub.f32 %v2738_v31, %v2762_v38  ;;  %v2745_v17 = vadd.f32 %v2743_v39, %v2678_v48  ;;  %v2746_v18 = vadd.f32 %v2744_v32, %v2679_v53 }
 0x374   : > { %v2752_v43 = vmul.f32 %v2751_v40, %v2738_v31 }
 0x375   : > { %v2785_v44 = vsub.f32 %v2745_v17, %v2779_v35  ;;  %v2764_v45 = vadd.f32 1.0, %v2763_v41  ;;  %v2786_v51 = vsub.f32 %v2746_v18, %v2783_v42  ;;  %v2767_v58 = vmul.f32 -0.5, %v2763_v41 }
 0x376   : > { %v2770_v6 = vand.u32 2147483647, %v2763_v41 }
 0x377   : > { %v2787_v47 = vmul.f32 %v2785_v44, %v2785_v44  ;;  %3645 = vlog2.f32 %v2764_v45  ;;  %v2788_v50 = vmul.f32 %v2786_v51, %v2786_v51  ;;  %v2768_v0 = vadd.f32 1.0, %v2767_v58 }
 0x378   : > { %vm2771_vm1 = vcmp.lt.f32.partialorder %v2770_v6, 0.0004427343 }
 0x379   : > { %v2789_v60 = vadd.f32 %v2788_v50, %v2787_v47  ;;  %v2769_v5 = vmul.f32 %v2768_v0, %v2763_v41 }
 0x37b   : > { %v3644_v61 = vpop.eup %3643  ;;  %v2790_v63 = vrot.slane %v2789_v60, 4 }
 0x37c   : > { %v2749_v56 = vmul.f32 0.6931472, %v3644_v61 }
 0x37d   : > { %v2791_v13 = vadd.f32 %v2790_v63, %v2789_v60 }
 0x37e   : > { %v2755_v54 = vsel %vm2754_vm0, %v2752_v43, %v2749_v56 }
 0x37f   : > { %v2756_v48 = vmul.f32 15.0, %v2755_v54  ;;  %v2792_v53 = vrot.slane %v2791_v13, 2 }
 0x381   : > { %v3646_v4 = vpop.eup %3645  ;;  %v2758_v3 = vrot.slane %v2756_v48, 2  ;;  %v2793_v8 = vadd.f32 %v2792_v53, %v2791_v13 }
 0x382   : > { %v2766_v7 = vmul.f32 0.6931472, %v3646_v4 }
 0x383   : > { %v2760_v2 = vadd.f32 %v2758_v3, %v2709_v33  ;;  %v2794_v11 = vrot.slane %v2793_v8, 1 }
 0x384   : > { %v2772_v1 = vsel %vm2771_vm1, %v2769_v5, %v2766_v7 }
 0x385   : > { %v2774_v9 = vrot.slane %v2772_v1, 2  ;;  %v2795_v16 = vadd.f32 %v2794_v11, %v2793_v8 }
 0x387   : > { %v2776_v12 = vadd.f32 %v2774_v9, %v2760_v2  ;;  %3647 = vrsqrt.f32 %v2795_v16  ;;  %vm2798_vm2 = vcmp.eq.f32.partialorder %v2795_v16, inf  ;;  %v2801_v15 = vand.u32 2147483648, %v2795_v16 }
 0x388   : > { %vm2800_vm3 = vcmp.eq.f32.partialorder %v2795_v16, 0.0 }
 0x391   : > { %v3648_v10 = vpop.eup %3647 }
 0x392   : > { %v2797_v14 = vmul.f32 %v3648_v10, %v2795_v16 }
 0x394   : > { %v2799_v19 = vsel %vm2798_vm2, %v2795_v16, %v2797_v14 }
 0x395   : > { %v2802_v20 = vsel %vm2800_vm3, %v2801_v15, %v2799_v19 }
 0x396   : > { %v2803_v30 = vadd.f32 %v2802_v20, %v4576_v46 }
 0x398   : > { %3649 = vrcp.f32 %v2803_v30 }
 0x3a2   : > { %v3650_v22 = vpop.eup %3649 }
 0x3a3   : > { %v2805_v33 = vmul.f32 %v3650_v22, %v4582_v55 }
 0x3a5   : > { %v2809_v23 = vrot.slane %v2805_v33, %v2808_v21  ;;  %v2814_v24 = vadd.f32 1.0, %v2805_v33  ;;  %v2828_v25 = vmul.f32 %v3650_v22, %v2805_v33  ;;  %v2817_v35 = vmul.f32 -0.5, %v2805_v33 }
 0x3a6   : > { %v2820_v41 = vand.u32 2147483647, %v2805_v33 }
 0x3a7   : > { %v2810_v34 = vmul.f32 %v2809_v23, %v2785_v44  ;;  %v2811_v26 = vmul.f32 %v2809_v23, %v2786_v51  ;;  %3651 = vlog2.f32 %v2814_v24  ;;  %v2829_v27 = vmul.f32 %v2828_v25, %v2802_v20 }
 0x3a8   : > { %v2818_v40 = vadd.f32 1.0, %v2817_v35  ;;  %vm2821_vm4 = vcmp.lt.f32.partialorder %v2820_v41, 0.0004427343 }
 0x3a9   : > { %v2812_v28 = vadd.f32 %v2810_v34, %v2745_v17  ;;  %v2813_v31 = vadd.f32 %v2811_v26, %v2746_v18  ;;  %v2830_v37 = vsub.f32 %v2805_v33, %v2829_v27 }
 0x3aa   : > { %v2819_v47 = vmul.f32 %v2818_v40, %v2805_v33 }
 0x3ab   : > { %v2507_v59 = vpop.f32.mrb[64].mxu1  ;;  %v2844_v46 = vmul.f32 %v2812_v28, %v2812_v28  ;;  %v2845_v36 = vmul.f32 %v2813_v31, %v2813_v31  ;;  %v2831_v38 = vadd.f32 1.0, %v2830_v37  ;;  %v2834_v44 = vmul.f32 -0.5, %v2830_v37 }
 0x3ac   : > { %v2508_v62 = vadd.f32 %v2507_v59, %v2435_v29  ;;  %v3455_v32 = vpop.f32.mrb[65].mxu1  ;;  %v2837_v54 = vand.u32 2147483647, %v2830_v37 }
 0x3ad   : > { %v2846_v39 = vadd.f32 %v2845_v36, %v2844_v46  ;;  %3653 = vlog2.f32 %v2831_v38  ;;  %v2835_v60 = vadd.f32 1.0, %v2834_v44 }
 0x3ae   : > { %v2511_v55 = vrot.slane %v2508_v62, 4  ;;  %vm2838_vm5 = vcmp.lt.f32.partialorder %v2837_v54, 0.0004427343 }
 0x3af   : > { %v2847_v42 = vrot.slane %v2846_v39, 4  ;;  %v2836_v53 = vmul.f32 %v2835_v60, %v2830_v37 }
 0x3b0   : > { %v2512_v43 = vmax.f32 %v2508_v62, %v2511_v55 }
 0x3b1   : > { %v3652_v45 = vpop.eup %3651  ;;  %v2848_v51 = vadd.f32 %v2847_v42, %v2846_v39 }
 0x3b2   : > { %v2513_v17 = vrot.slane %v2512_v43, 2  ;;  %v2816_v18 = vmul.f32 0.6931472, %v3652_v45 }
 0x3b3   : > { %v2849_v50 = vrot.slane %v2848_v51, 2 }
 0x3b4   : > { %v2514_v57 = vmax.f32 %v2512_v43, %v2513_v17  ;;  %v2822_v58 = vsel %vm2821_vm4, %v2819_v47, %v2816_v18 }
 0x3b5   : > { %v2823_v61 = vmul.f32 15.0, %v2822_v58  ;;  %v2850_v56 = vadd.f32 %v2849_v50, %v2848_v51 }
 0x3b6   : > { %v2515_v63 = vrot.slane %v2514_v57, 1 }
 0x3b7   : > { %v2825_v0 = vrot.slane %v2823_v61, 3  ;;  %v2851_v13 = vrot.slane %v2850_v56, 1  ;;  %v3654_v6 = vpop.eup %3653 }
 0x3b8   : > { %v2516_v48 = vmax.f32 %v2514_v57, %v2515_v63  ;;  %v2833_v3 = vmul.f32 0.6931472, %v3654_v6 }
 0x3b9   : > { %v2827_v4 = vadd.f32 %v2825_v0, %v2776_v12  ;;  %v2852_v7 = vadd.f32 %v2851_v13, %v2850_v56 }
 0x3ba   : > { %v2517_v5 = vsub.f32 %v2508_v62, %v2516_v48  ;;  %v2839_v8 = vsel %vm2838_vm5, %v2836_v53, %v2833_v3 }
 0x3bb   : > { %v2853_v2 = vmul.f32 -0.5, %v2852_v7  ;;  %v2841_v11 = vrot.slane %v2839_v8, 3 }
 0x3bc   : > { %v2518_v1 = vmul.f32 1.442695, %v2517_v5 }
 0x3bd   : > { %v3130_v9 = vadd.f32 -14.703016, %v2853_v2  ;;  %v2843_v16 = vadd.f32 %v2841_v11, %v2827_v4 }
 0x3be   : > { %3655 = vpow2.f32 %v2518_v1 }
 0x3bf   : > { %v2855_v10 = vadd.f32 %v3130_v9, %v2843_v16 }
 0x3c1   : > { %2868 = vst [vmem:[%s943_s13] sm:$0x1] %v2855_v10 }
 0x3c2   : > { %3674 = shalt.err (!%p3671_p5)
}
 0x3c3   : > { %s3675_s12 = scalar_lea.hbm %s4601_s15, 16  ;;  %s3679_s24 = scalar_lea.hbm %s4689_s11, 32 }
 0x3c4   : > { %p3676_p7 = scmp.ne.s32.totalorder %s4601_s15, %s3675_s12  ;;  %p3680_p12 = scmp.lt.u32.totalorder %s4601_s15, %s4689_s11 }
 0x3c5   : > { %p3681_p13 = scmp.lt.u32.totalorder %s3679_s24, %s3675_s12  ;;  %p3683_p1 = scmp.lt.u32.totalorder %s3675_s12, %s4601_s15 }
 0x3c6   : > { %p3677_p10 = pnand %p3676_p7, %p3865_p6 }
 0x3c7   : > { %p3682_p0 = por %p3681_p13, %p3680_p12 }
 0x3c8   : > { %p3678_p11 = pneg %p3677_p10 }
 0x3c9   : > { %p3684_p2 = por %p3683_p1, %p3682_p0 }
 0x3cb   : > { %p3685_p3 = pnand %p3684_p2, %p3678_p11 }
 0x3cd   : > { %3688 = shalt.err (!%p3685_p3)
}
 0x3ce   : > { %3492 = dma.vmem_to_hbm [thread:$0]  (%p3865_p6), %s4603_s0, 16, %s4601_s15, %s2875_s26   ;;  %v2856_v12 = vadd.f32 20.248194, %v2855_v10  ;;  %v3656_v14 = vpop.eup %3655 }
 0x3cf   : > { %v2520_v15 = vrot.slane %v3656_v14, 4  ;;  %s3000_s16 = sshll.u32 %s4144_s22, 3  ;;  %s3133_s0 = sshll.u32 %s3847_s21, 7 }
 0x3d0   : > { %v3131_v19 = vclamps-f32 %v2856_v12, 30.0  ;;  %s937_s15 = scalar_lea.vmem [#allocation3], %s3000_s16  ;;  %s4634_s13 = scalar_lea.hbm %s4688_s10, %s3133_s0 }
 0x3d1   : > { %v2521_v20 = vadd.f32 %v3656_v14, %v2520_v15  ;;  %s2887_s26 = sshll.u32 %s937_s15, 4  ;;  %s2870_s14 = scalar_lea.sflag [#allocation4], %s4144_s22  ;;  %s4636_s26 = int_to_ptr.vmem [resolvable:$true] %s2887_s26 }
 0x3d2   : > { %v2859_v21 = vmul.f32 1.442695, %v3131_v19  ;;  %s3689_s24 = scalar_lea.vmem %s4636_s26, 128  ;;  %s3765_s21 = smov [#allocation3]  }
 0x3d3   : > { %v2522_v30 = vrot.slane %v2521_v20, 2  ;;  %p3690_p4 = scmp.ne.s32.totalorder %s4636_s26, %s3689_s24  ;;  %s3693_s25 = sshll.u32 %s3765_s21, 4  ;;  %s3694_s25 = int_to_ptr.vmem [resolvable:$false] %s3693_s25 }
 0x3d4   : > { %3657 = vpow2.f32 %v2859_v21  ;;  %s3695_s29 = scalar_lea.vmem %s3694_s25, 256  ;;  %p3696_p10 = scmp.lt.s32.totalorder %s4636_s26, %s3694_s25 }
 0x3d5   : > { %v2523_v22 = vadd.f32 %v2522_v30, %v2521_v20  ;;  %p3691_p5 = pnand %p3690_p4, %p3865_p6  ;;  %p3697_p11 = scmp.lt.s32.totalorder %s3695_s29, %s3689_s24 }
 0x3d7   : > { %v2524_v33 = vrot.slane %v2523_v22, 1  ;;  %p3692_p7 = pneg %p3691_p5  ;;  %p3698_p12 = por %p3697_p11, %p3696_p10 }
 0x3d9   : > { %v2525_v23 = vadd.f32 %v2524_v33, %v2523_v22  ;;  %p3699_p13 = pnand %p3698_p12, %p3692_p7 }
 0x3db   : > { %3659 = vrcp.f32 %v2525_v23 }
 0x3de   : > { %v3658_v24 = vpop.eup %3657 }
 0x3df   : > { %v2864_v26 = vrot.slane %v3658_v24, %v2613_v52 }
 0x3e5   : > { %v3660_v25 = vpop.eup %3659 }
 0x3e6   : > { %v2527_v34 = vmul.f32 %v3660_v25, %v3656_v14 }
 0x3e8   : > { %v2865_v27 = vmul.f32 %v2864_v26, %v2527_v34 }
 0x3ea   : > { %v2866_v29 = vadd.f32 1.0, %v2865_v27 }
 0x3ec   : > { %2867 = vst [vmem:[%s937_s15] sm:$0xff] %v2866_v29 }
 0x3ed   : > { %3702 = shalt.err (!%p3699_p13)
}
 0x3ee   : > { %s3703_s22 = scalar_lea.hbm %s4634_s13, 128  ;;  %s3707_s15 = scalar_lea.hbm %s4688_s10, 256 }
 0x3ef   : > { %p3704_p0 = scmp.ne.s32.totalorder %s4634_s13, %s3703_s22  ;;  %p3708_p3 = scmp.lt.u32.totalorder %s4634_s13, %s4688_s10 }
 0x3f0   : > { %p3709_p4 = scmp.lt.u32.totalorder %s3707_s15, %s3703_s22  ;;  %p3711_p7 = scmp.lt.u32.totalorder %s3703_s22, %s4634_s13 }
 0x3f1   : > { %p3705_p1 = pnand %p3704_p0, %p3865_p6 }
 0x3f2   : > { %p3710_p5 = por %p3709_p4, %p3708_p3 }
 0x3f3   : > { %p3706_p2 = pneg %p3705_p1 }
 0x3f4   : > { %p3712_p10 = por %p3711_p7, %p3710_p5 }
 0x3f6   : > { %p3713_p11 = pnand %p3712_p10, %p3706_p2 }
 0x3f8   : > { %3716 = shalt.err (!%p3713_p11)
}
 0x3f9   : > { %3491 = dma.vmem_to_hbm [thread:$0]  (%p3865_p6), %s4636_s26, 128, %s4634_s13, %s2870_s14  }
 0x3fa PF: > { %s2912_s24 = sand.u32 1, %s3743_s17   ;;  %p3496_p12 = pnand %p2995_p9, %p3869_p8 }
 0x3fb   : > { %s2913_s21 = scalar_lea.sflag [#allocation4], %s2912_s24 }
 0x3fc   : > { %3734 = dma.done.wait (!%p3496_p12), %s2913_s21, 128  }
 0x3fd   : > { %3736 = vsyncadd (!%p3496_p12), %s2913_s21, 4294967168  ;;  %s2922_s25 = scalar_lea.sflag [#allocation6], %s2912_s24 }
 0x3fe   : > { %3738 = dma.done.wait (!%p3496_p12), %s2922_s25, 16  }
 0x3ff   : > { %3740 = vsyncadd (!%p3496_p12), %s2922_s25, 4294967280  ;;  %s4695_s27 = sld [smem:[#allocation9_spill]]  ;;  %p25_p6 = scmp.ge.s32.totalorder %s3851_s23, 4  }
 0x400   : > { %s4696_s17 = smov %s3747_s18  ;;  %s4697_s18 = smov %s3751_s19 }
 0x401   : > { %s4699_s20 = smov %s3851_s23  ;;  %27 = sbr.rel (!%p25_p6) target bundleno = 7 (0x7), region = 158 }
 0x405   : > { %s4698_s19 = smov %s4695_s27 }
 0x408   :  { %2926 = vsyncpa [#allocation4], 1 }
 0x409   :  { %2928 = vsyncpa [#allocation4 + $0x1], 1 }
 0x40a   :  { %2929 = vsyncpa [#allocation6], 1 }
 0x40b   :  { %2931 = vsyncpa [#allocation6 + $0x1], 1 }

</bundles_post_ra>
